<compile_context>
chip_gen: v7x
topology: tpu7x:2x2x1
jax: 0.10.0
libtpu: 0.0.40
codegen_flags: <defaults>
</compile_context>

<pallas_src>
import functools

import jax
import jax.numpy as jnp
from jax import lax
from jax.experimental import pallas as pl
from jax.experimental.pallas import tpu as pltpu

BN_EPS = 1e-5


def _make_tap_mask(H, W):
    """(9, H*W) f32 0/1 masks implementing zero padding for each 3x3 tap."""
    ry = jnp.arange(H, dtype=jnp.int32)[:, None]
    cx = jnp.arange(W, dtype=jnp.int32)[None, :]
    rows = []
    for dy in (-1, 0, 1):
        for dx in (-1, 0, 1):
            ok = ((ry + dy >= 0) & (ry + dy < H) &
                  (cx + dx >= 0) & (cx + dx < W))
            rows.append(ok.reshape(-1))
    return jnp.stack(rows, axis=0).astype(jnp.float32)


def _conv3x3_im2col(z, w_mat, tap_mask, patch_ref, W, HW):
    """3x3 'SAME' conv of z:(C, H*W) f32 with w_mat:(Co, 9*C) as ONE matmul.

    The 9 spatial taps are lane-rolls (XLU, otherwise idle) of the flattened
    image, zeroed at the borders by the precomputed 0/1 masks (VPU) -- this IS
    the zero padding -- and written into the VMEM im2col scratch `patch_ref`
    (9*C, H*W) in the matmul dtype.  Every row is overwritten on each call, so
    the persistent scratch never leaks state across images / grid steps.
    Returns the f32 accumulator (Co, H*W), lane-dense in H*W.
    """
    C = z.shape[0]
    t = 0
    for dy in (-1, 0, 1):
        for dx in (-1, 0, 1):
            d = dy * W + dx
            if d == 0:
                s = z
            else:
                s = pltpu.roll(z, shift=(-d) % HW, axis=1) * tap_mask[t:t + 1, :]
            patch_ref[t * C:(t + 1) * C, :] = s.astype(patch_ref.dtype)
            t += 1
    return jnp.dot(w_mat, patch_ref[...], preferred_element_type=jnp.float32)


def _vmem_budget():
    """~3/4 of physical VMEM: ~96 MiB on v5e/v6e (128 MiB), ~48 MiB on v7x."""
    cap = 64 * 1024 * 1024            # v7x-safe fallback
    try:
        cap = int(pltpu.get_tpu_info().vmem_capacity_bytes)
    except Exception:
        pass
    return (3 * cap) // 4


def _compiler_params(vmem_limit_bytes):
    return pltpu.CompilerParams(dimension_semantics=("parallel",),
                                vmem_limit_bytes=int(vmem_limit_bytes))


def outconv2_pallas(x_nchw, w1, b1, gamma, beta, w2, b2,
                    *, compute_dtype=jnp.bfloat16):
    """x_nchw: (N, Cin, H, W) f32; w1/w2 in HWIO -> (N, Cout, H, W) f32.

    compute_dtype is the MXU-operand / y1-intermediate dtype (bfloat16 default
    for MXU throughput and halved HBM/VMEM traffic; float32 for bit-faithful
    f32 numerics).  Matmul accumulation is always f32.
    """
    N, Cin, H, W = x_nchw.shape
    Cmid = w1.shape[-1]
    Cout = w2.shape[-1]
    HW = H * W
    f32 = jnp.float32
    cd_bytes = jnp.dtype(compute_dtype).itemsize
    y1_dtype = compute_dtype

    # ---- free reshapes / tiny weight repacks (NCHW kept: no transposes) ----
    x = x_nchw.reshape(N, Cin, HW)
    w1_mat = jnp.transpose(w1, (3, 0, 1, 2)).reshape(Cmid, 9 * Cin)
    w1_mat = w1_mat.astype(compute_dtype)
    w2_mat = jnp.transpose(w2, (3, 0, 1, 2)).reshape(Cout, 9 * Cmid)
    w2_mat = w2_mat.astype(compute_dtype)
    b1c = b1.reshape(Cmid, 1).astype(f32)
    b2c = b2.reshape(Cout, 1).astype(f32)
    tap_mask = _make_tap_mask(H, W)                               # (9, HW) f32

    # ---- pick images-per-step G from the per-generation VMEM budget --------
    budget = _vmem_budget()
    per_img = 2 * HW * (Cin * 4 + 2 * Cmid * cd_bytes + Cout * 4)  # dbl-buffered
    fixed = (9 * max(Cin, Cmid) * HW * cd_bytes                    # im2col scratch
             + 2 * (Cmid * 9 * Cin + Cout * 9 * Cmid) * cd_bytes   # weights
             + 2 * 9 * HW * 4 + 64 * 1024)                         # masks + slack
    G = int(max(1, min(N, (budget - fixed) // max(per_img, 1))))
    while N % G:                      # keep equal-sized groups (exact BN merge)
        G -= 1
    n_groups = N // G
    vmem_limit = budget

    # ---------------- kernel 1: conv1 + per-group BN partial stats ----------
    def conv1_kernel(x_ref, w_ref, b_ref, m_ref, y_ref, st_ref, patch_ref):
        w = w_ref[...]
        mask = m_ref[...]
        b = b_ref[...]
        mean_acc = jnp.zeros((Cmid, 1), f32)
        m2_acc = jnp.zeros((Cmid, 1), f32)
        cnt = 0.0
        for g in range(G):                                  # static, unrolled
            y = _conv3x3_im2col(x_ref[g], w, mask, patch_ref, W, HW) + b
            y_ref[g] = y.astype(y_ref.dtype)                # (Cmid, HW) lane-dense
            m_g = jnp.mean(y, axis=1, keepdims=True)        # stats from f32 acc
            dv = y - m_g
            m2_g = jnp.sum(dv * dv, axis=1, keepdims=True)
            if g == 0:
                mean_acc, m2_acc, cnt = m_g, m2_g, float(HW)
            else:                                           # Chan parallel merge
                delta = m_g - mean_acc
                tot = cnt + float(HW)
                mean_acc = mean_acc + delta * (float(HW) / tot)
                m2_acc = m2_acc + m2_g + delta * delta * (cnt * float(HW) / tot)
                cnt = tot
        st_ref[:, 0:1] = mean_acc                           # merged (Cmid, 2) block
        st_ref[:, 1:2] = m2_acc

    bytes1 = (N * Cin * HW * 4 + N * Cmid * HW * cd_bytes
              + n_groups * Cmid * 2 * 4
              + Cmid * 9 * Cin * cd_bytes + Cmid * 4 + 9 * HW * 4)
    y1, stats = pl.pallas_call(
        conv1_kernel,
        out_shape=(jax.ShapeDtypeStruct((N, Cmid, HW), y1_dtype),
                   jax.ShapeDtypeStruct((n_groups, Cmid, 2), f32)),
        grid=(n_groups,),
        in_specs=[
            pl.BlockSpec((G, Cin, HW), lambda n: (n, 0, 0)),
            pl.BlockSpec((Cmid, 9 * Cin), lambda n: (0, 0)),
            pl.BlockSpec((Cmid, 1), lambda n: (0, 0)),
            pl.BlockSpec((9, HW), lambda n: (0, 0)),
        ],
        out_specs=(
            pl.BlockSpec((G, Cmid, HW), lambda n: (n, 0, 0)),
            pl.BlockSpec((None, Cmid, 2), lambda n: (n, 0, 0)),
        ),
        scratch_shapes=[pltpu.VMEM((9 * Cin, HW), compute_dtype)],
        compiler_params=_compiler_params(vmem_limit),
        cost_estimate=pl.CostEstimate(
            flops=2 * N * HW * 9 * Cin * Cmid,
            transcendentals=0,
            bytes_accessed=int(bytes1)),
    )(x, w1_mat, b1c, tap_mask)

    # ---- tiny global BN reduction (exact equal-count merge, plain XLA) -----
    g_mean = stats[:, :, 0]                                  # (n_groups, Cmid)
    g_m2 = stats[:, :, 1]
    mean = jnp.mean(g_mean, axis=0)
    m2 = jnp.sum(g_m2, axis=0) + float(G * HW) * jnp.sum(
        (g_mean - mean) ** 2, axis=0)
    var = m2 / float(N * HW)                                 # biased (BN train)
    scale = gamma.astype(f32) * lax.rsqrt(var + BN_EPS)
    shift = beta.astype(f32) - mean * scale

    # ---------------- kernel 2: BN + ReLU + conv2 ---------------------------
    def conv2_kernel(y_ref, sc_ref, sh_ref, w_ref, b_ref, m_ref, o_ref,
                     patch_ref):
        w = w_ref[...]
        mask = m_ref[...]
        b = b_ref[...]
        sc = sc_ref[...]
        sh = sh_ref[...]
        for g in range(G):                                   # static, unrolled
            z = jnp.maximum(y_ref[g].astype(f32) * sc + sh, 0.0)  # BN+ReLU, f32
            o = _conv3x3_im2col(z, w, mask, patch_ref, W, HW) + b
            o_ref[g] = o.astype(o_ref.dtype)

    bytes2 = (N * Cmid * HW * cd_bytes + N * Cout * HW * 4
              + Cout * 9 * Cmid * cd_bytes + Cout * 4 + 2 * Cmid * 4
              + 9 * HW * 4)
    out = pl.pallas_call(
        conv2_kernel,
        out_shape=jax.ShapeDtypeStruct((N, Cout, HW), f32),
        grid=(n_groups,),
        in_specs=[
            pl.BlockSpec((G, Cmid, HW), lambda n: (n, 0, 0)),
            pl.BlockSpec((Cmid, 1), lambda n: (0, 0)),
            pl.BlockSpec((Cmid, 1), lambda n: (0, 0)),
            pl.BlockSpec((Cout, 9 * Cmid), lambda n: (0, 0)),
            pl.BlockSpec((Cout, 1), lambda n: (0, 0)),
            pl.BlockSpec((9, HW), lambda n: (0, 0)),
        ],
        out_specs=pl.BlockSpec((G, Cout, HW), lambda n: (n, 0, 0)),
        scratch_shapes=[pltpu.VMEM((9 * Cmid, HW), compute_dtype)],
        compiler_params=_compiler_params(vmem_limit),
        cost_estimate=pl.CostEstimate(
            flops=2 * N * HW * 9 * Cmid * Cout,
            transcendentals=0,
            bytes_accessed=int(bytes2)),
    )(y1, scale.reshape(Cmid, 1), shift.reshape(Cmid, 1), w2_mat, b2c,
      tap_mask)

    return out.reshape(N, Cout, H, W)


def reference(x, w1, b1, gamma, beta, w2, b2):
    """Pure-JAX reference (matches PyTorch training-mode BatchNorm2d forward)."""
    dn = ('NCHW', 'HWIO', 'NCHW')
    y1 = lax.conv_general_dilated(x, w1, (1, 1), 'SAME', dimension_numbers=dn)
    y1 = y1 + b1[None, :, None, None]
    mean = jnp.mean(y1, axis=(0, 2, 3), keepdims=True)
    var = jnp.var(y1, axis=(0, 2, 3), keepdims=True)       # biased variance
    y1 = ((y1 - mean) * lax.rsqrt(var + BN_EPS) * gamma[None, :, None, None]
          + beta[None, :, None, None])
    y1 = jnp.maximum(y1, 0.0)
    y2 = lax.conv_general_dilated(y1, w2, (1, 1), 'SAME', dimension_numbers=dn)
    return y2 + b2[None, :, None, None]


if __name__ == "__main__":
    N, Cin, H, W = 2, 4, 16, 16
    Cmid = Cin // 2           # mid_channels defaults to in_channels // 2
    Cout = 4

    key = jax.random.PRNGKey(0)
    k1, k2, k3, k4, k5, k6, k7 = jax.random.split(key, 7)
    x = jax.random.normal(k1, (N, Cin, H, W), jnp.float32)
    w1 = jax.random.normal(k2, (3, 3, Cin, Cmid), jnp.float32) * 0.1
    b1 = jax.random.normal(k3, (Cmid,), jnp.float32) * 0.1
    gamma = 1.0 + 0.1 * jax.random.normal(k6, (Cmid,), jnp.float32)
    beta = 0.1 * jax.random.normal(k7, (Cmid,), jnp.float32)
    w2 = jax.random.normal(k4, (3, 3, Cmid, Cout), jnp.float32) * 0.1
    b2 = jax.random.normal(k5, (Cout,), jnp.float32) * 0.1

    y_ref = reference(x, w1, b1, gamma, beta, w2, b2)

    # Bit-faithful f32 path: validates exact module semantics.
    fn_f32 = jax.jit(functools.partial(outconv2_pallas,
                                       compute_dtype=jnp.float32))
    y_f32 = jax.block_until_ready(fn_f32(x, w1, b1, gamma, beta, w2, b2))
    assert y_f32.shape == (N, Cout, H, W)
    assert jnp.allclose(y_f32, y_ref, rtol=2e-4, atol=2e-4), \
        float(jnp.max(jnp.abs(y_f32 - y_ref)))

    # Default fast path: bf16 MXU operands + bf16 y1 intermediate, f32 accum.
    fn = jax.jit(outconv2_pallas)
    y = jax.block_until_ready(fn(x, w1, b1, gamma, beta, w2, b2))
    assert y.shape == (N, Cout, H, W)
    assert jnp.allclose(y, y_ref, rtol=5e-2, atol=5e-2), \
        float(jnp.max(jnp.abs(y - y_ref)))

    print("KERNEL_OK")
</pallas_src>

<mosaic_0001>
module attributes {stable_mosaic.version = 11 : i64} {
  func.func @conv1_kernel(%arg0: i32, %arg1: memref<2x4x256xf32, #tpu.memory_space<vmem>>, %arg2: memref<2x36xf32, #tpu.memory_space<vmem>>, %arg3: memref<2x1xf32, #tpu.memory_space<vmem>>, %arg4: memref<9x256xf32, #tpu.memory_space<vmem>>, %arg5: memref<2x2x256xf32, #tpu.memory_space<vmem>>, %arg6: memref<1x2x2xf32, #tpu.memory_space<vmem>>, %arg7: memref<36x256xf32, #tpu.memory_space<vmem>>) attributes {dimension_semantics = [#tpu.dimension_semantics<parallel>], iteration_bounds = array<i64: 1>, scalar_prefetch = 0 : i64, scratch_operands = 1 : i64, tpu.core_type = #tpu.core_type<tc>, window_params = [{transform_indices = @transform_0, window_bounds = array<i64: 2, 4, 256>}, {pipeline_mode = #tpu.pipeline_mode<synchronous>, transform_indices = @transform_1, window_bounds = array<i64: 2, 36>}, {pipeline_mode = #tpu.pipeline_mode<synchronous>, transform_indices = @transform_2, window_bounds = array<i64: 2, 1>}, {pipeline_mode = #tpu.pipeline_mode<synchronous>, transform_indices = @transform_3, window_bounds = array<i64: 9, 256>}, {transform_indices = @transform_4, window_bounds = array<i64: 2, 2, 256>}, {transform_indices = @transform_5, window_bounds = array<i64: 1, 2, 2>}]} {
    %c0 = arith.constant 0 : index
    %c0_0 = arith.constant 0 : index
    %0 = vector.load %arg2[%c0, %c0_0] : memref<2x36xf32, #tpu.memory_space<vmem>>, vector<2x36xf32>
    %c0_1 = arith.constant 0 : index
    %c0_2 = arith.constant 0 : index
    %1 = vector.load %arg4[%c0_1, %c0_2] : memref<9x256xf32, #tpu.memory_space<vmem>>, vector<9x256xf32>
    %c0_3 = arith.constant 0 : index
    %c0_4 = arith.constant 0 : index
    %2 = vector.load %arg3[%c0_3, %c0_4] : memref<2x1xf32, #tpu.memory_space<vmem>>, vector<2x1xf32>
    %c0_5 = arith.constant 0 : index
    %c0_6 = arith.constant 0 : index
    %c0_7 = arith.constant 0 : index
    %3 = vector.load %arg1[%c0_5, %c0_6, %c0_7] : memref<2x4x256xf32, #tpu.memory_space<vmem>>, vector<1x4x256xf32>
    %4 = vector.shape_cast %3 : vector<1x4x256xf32> to vector<4x256xf32>
    %c17_i32 = arith.constant 17 : i32
    %5 = tpu.dynamic_rotate %4 by %c17_i32 dim 1 : vector<4x256xf32>, i32 -> vector<4x256xf32>
    %6 = vector.extract_strided_slice %1 {offsets = [0, 0], sizes = [1, 256], strides = [1, 1]} : vector<9x256xf32> to vector<1x256xf32>
    %7 = vector.broadcast %6 : vector<1x256xf32> to vector<4x256xf32>
    %8 = arith.mulf %5, %7 : vector<4x256xf32>
    %c0_8 = arith.constant 0 : index
    %c0_9 = arith.constant 0 : index
    %9 = vector.load %arg7[%c0_8, %c0_9] : memref<36x256xf32, #tpu.memory_space<vmem>>, vector<4x256xf32>
    tpu.vector_store %arg7[%c0_8, %c0_9], %8 {strides = array<i32>} : memref<36x256xf32, #tpu.memory_space<vmem>>, vector<4x256xf32>,
    %c16_i32 = arith.constant 16 : i32
    %10 = tpu.dynamic_rotate %4 by %c16_i32 dim 1 : vector<4x256xf32>, i32 -> vector<4x256xf32>
    %11 = vector.extract_strided_slice %1 {offsets = [1, 0], sizes = [1, 256], strides = [1, 1]} : vector<9x256xf32> to vector<1x256xf32>
    %12 = vector.broadcast %11 : vector<1x256xf32> to vector<4x256xf32>
    %13 = arith.mulf %10, %12 : vector<4x256xf32>
    %c4 = arith.constant 4 : index
    %c0_10 = arith.constant 0 : index
    %14 = vector.load %arg7[%c4, %c0_10] : memref<36x256xf32, #tpu.memory_space<vmem>>, vector<4x256xf32>
    tpu.vector_store %arg7[%c4, %c0_10], %13 {strides = array<i32>} : memref<36x256xf32, #tpu.memory_space<vmem>>, vector<4x256xf32>,
    %c15_i32 = arith.constant 15 : i32
    %15 = tpu.dynamic_rotate %4 by %c15_i32 dim 1 : vector<4x256xf32>, i32 -> vector<4x256xf32>
    %16 = vector.extract_strided_slice %1 {offsets = [2, 0], sizes = [1, 256], strides = [1, 1]} : vector<9x256xf32> to vector<1x256xf32>
    %17 = vector.broadcast %16 : vector<1x256xf32> to vector<4x256xf32>
    %18 = arith.mulf %15, %17 : vector<4x256xf32>
    %c8 = arith.constant 8 : index
    %c0_11 = arith.constant 0 : index
    %19 = vector.load %arg7[%c8, %c0_11] : memref<36x256xf32, #tpu.memory_space<vmem>>, vector<4x256xf32>
    tpu.vector_store %arg7[%c8, %c0_11], %18 {strides = array<i32>} : memref<36x256xf32, #tpu.memory_space<vmem>>, vector<4x256xf32>,
    %c1_i32 = arith.constant 1 : i32
    %20 = tpu.dynamic_rotate %4 by %c1_i32 dim 1 : vector<4x256xf32>, i32 -> vector<4x256xf32>
    %21 = vector.extract_strided_slice %1 {offsets = [3, 0], sizes = [1, 256], strides = [1, 1]} : vector<9x256xf32> to vector<1x256xf32>
    %22 = vector.broadcast %21 : vector<1x256xf32> to vector<4x256xf32>
    %23 = arith.mulf %20, %22 : vector<4x256xf32>
    %c12 = arith.constant 12 : index
    %c0_12 = arith.constant 0 : index
    %24 = vector.load %arg7[%c12, %c0_12] : memref<36x256xf32, #tpu.memory_space<vmem>>, vector<4x256xf32>
    tpu.vector_store %arg7[%c12, %c0_12], %23 {strides = array<i32>} : memref<36x256xf32, #tpu.memory_space<vmem>>, vector<4x256xf32>,
    %c16 = arith.constant 16 : index
    %c0_13 = arith.constant 0 : index
    %25 = vector.load %arg7[%c16, %c0_13] : memref<36x256xf32, #tpu.memory_space<vmem>>, vector<4x256xf32>
    tpu.vector_store %arg7[%c16, %c0_13], %4 {strides = array<i32>} : memref<36x256xf32, #tpu.memory_space<vmem>>, vector<4x256xf32>,
    %c255_i32 = arith.constant 255 : i32
    %26 = tpu.dynamic_rotate %4 by %c255_i32 dim 1 : vector<4x256xf32>, i32 -> vector<4x256xf32>
    %27 = vector.extract_strided_slice %1 {offsets = [5, 0], sizes = [1, 256], strides = [1, 1]} : vector<9x256xf32> to vector<1x256xf32>
    %28 = vector.broadcast %27 : vector<1x256xf32> to vector<4x256xf32>
    %29 = arith.mulf %26, %28 : vector<4x256xf32>
    %c20 = arith.constant 20 : index
    %c0_14 = arith.constant 0 : index
    %30 = vector.load %arg7[%c20, %c0_14] : memref<36x256xf32, #tpu.memory_space<vmem>>, vector<4x256xf32>
    tpu.vector_store %arg7[%c20, %c0_14], %29 {strides = array<i32>} : memref<36x256xf32, #tpu.memory_space<vmem>>, vector<4x256xf32>,
    %c241_i32 = arith.constant 241 : i32
    %31 = tpu.dynamic_rotate %4 by %c241_i32 dim 1 : vector<4x256xf32>, i32 -> vector<4x256xf32>
    %32 = vector.extract_strided_slice %1 {offsets = [6, 0], sizes = [1, 256], strides = [1, 1]} : vector<9x256xf32> to vector<1x256xf32>
    %33 = vector.broadcast %32 : vector<1x256xf32> to vector<4x256xf32>
    %34 = arith.mulf %31, %33 : vector<4x256xf32>
    %c24 = arith.constant 24 : index
    %c0_15 = arith.constant 0 : index
    %35 = vector.load %arg7[%c24, %c0_15] : memref<36x256xf32, #tpu.memory_space<vmem>>, vector<4x256xf32>
    tpu.vector_store %arg7[%c24, %c0_15], %34 {strides = array<i32>} : memref<36x256xf32, #tpu.memory_space<vmem>>, vector<4x256xf32>,
    %c240_i32 = arith.constant 240 : i32
    %36 = tpu.dynamic_rotate %4 by %c240_i32 dim 1 : vector<4x256xf32>, i32 -> vector<4x256xf32>
    %37 = vector.extract_strided_slice %1 {offsets = [7, 0], sizes = [1, 256], strides = [1, 1]} : vector<9x256xf32> to vector<1x256xf32>
    %38 = vector.broadcast %37 : vector<1x256xf32> to vector<4x256xf32>
    %39 = arith.mulf %36, %38 : vector<4x256xf32>
    %c28 = arith.constant 28 : index
    %c0_16 = arith.constant 0 : index
    %40 = vector.load %arg7[%c28, %c0_16] : memref<36x256xf32, #tpu.memory_space<vmem>>, vector<4x256xf32>
    tpu.vector_store %arg7[%c28, %c0_16], %39 {strides = array<i32>} : memref<36x256xf32, #tpu.memory_space<vmem>>, vector<4x256xf32>,
    %c239_i32 = arith.constant 239 : i32
    %41 = tpu.dynamic_rotate %4 by %c239_i32 dim 1 : vector<4x256xf32>, i32 -> vector<4x256xf32>
    %42 = vector.extract_strided_slice %1 {offsets = [8, 0], sizes = [1, 256], strides = [1, 1]} : vector<9x256xf32> to vector<1x256xf32>
    %43 = vector.broadcast %42 : vector<1x256xf32> to vector<4x256xf32>
    %44 = arith.mulf %41, %43 : vector<4x256xf32>
    %c32 = arith.constant 32 : index
    %c0_17 = arith.constant 0 : index
    %45 = vector.load %arg7[%c32, %c0_17] : memref<36x256xf32, #tpu.memory_space<vmem>>, vector<4x256xf32>
    tpu.vector_store %arg7[%c32, %c0_17], %44 {strides = array<i32>} : memref<36x256xf32, #tpu.memory_space<vmem>>, vector<4x256xf32>,
    %c0_18 = arith.constant 0 : index
    %c0_19 = arith.constant 0 : index
    %46 = vector.load %arg7[%c0_18, %c0_19] : memref<36x256xf32, #tpu.memory_space<vmem>>, vector<36x256xf32>
    %cst = arith.constant dense<0.000000e+00> : vector<2x256xf32>
    %47 = tpu.matmul %0, %46, %cst {dimension_numbers = #tpu.dot_dimension_numbers<[1], [0], [0], [1], [0, 0, 1, 1], [], []>} : vector<2x36xf32>, vector<36x256xf32>, vector<2x256xf32> -> vector<2x256xf32>
    %48 = vector.broadcast %2 : vector<2x1xf32> to vector<2x256xf32>
    %49 = arith.addf %47, %48 : vector<2x256xf32>
    %c0_20 = arith.constant 0 : index
    %c0_21 = arith.constant 0 : index
    %c0_22 = arith.constant 0 : index
    %50 = vector.load %arg5[%c0_20, %c0_21, %c0_22] : memref<2x2x256xf32, #tpu.memory_space<vmem>>, vector<1x2x256xf32>
    %51 = vector.shape_cast %50 : vector<1x2x256xf32> to vector<2x256xf32>
    %52 = vector.shape_cast %49 : vector<2x256xf32> to vector<1x2x256xf32>
    tpu.vector_store %arg5[%c0_20, %c0_21, %c0_22], %52 {strides = array<i32>} : memref<2x2x256xf32, #tpu.memory_space<vmem>>, vector<1x2x256xf32>,
    %cst_23 = arith.constant dense<0.000000e+00> : vector<2xf32>
    %53 = vector.multi_reduction <add>, %49, %cst_23 [1] : vector<2x256xf32> to vector<2xf32>
    %54 = vector.shape_cast %53 : vector<2xf32> to vector<2x1xf32>
    %cst_24 = arith.constant 2.560000e+02 : f32
    %55 = vector.broadcast %cst_24 : f32 to vector<2x1xf32>
    %56 = arith.divf %54, %55 : vector<2x1xf32>
    %57 = vector.broadcast %56 : vector<2x1xf32> to vector<2x256xf32>
    %58 = arith.subf %49, %57 : vector<2x256xf32>
    %59 = arith.mulf %58, %58 : vector<2x256xf32>
    %cst_25 = arith.constant dense<0.000000e+00> : vector<2xf32>
    %60 = vector.multi_reduction <add>, %59, %cst_25 [1] : vector<2x256xf32> to vector<2xf32>
    %61 = vector.shape_cast %60 : vector<2xf32> to vector<2x1xf32>
    %c1 = arith.constant 1 : index
    %c0_26 = arith.constant 0 : index
    %c0_27 = arith.constant 0 : index
    %62 = vector.load %arg1[%c1, %c0_26, %c0_27] : memref<2x4x256xf32, #tpu.memory_space<vmem>>, vector<1x4x256xf32>
    %63 = vector.shape_cast %62 : vector<1x4x256xf32> to vector<4x256xf32>
    %c17_i32_28 = arith.constant 17 : i32
    %64 = tpu.dynamic_rotate %63 by %c17_i32_28 dim 1 : vector<4x256xf32>, i32 -> vector<4x256xf32>
    %65 = vector.extract_strided_slice %1 {offsets = [0, 0], sizes = [1, 256], strides = [1, 1]} : vector<9x256xf32> to vector<1x256xf32>
    %66 = vector.broadcast %65 : vector<1x256xf32> to vector<4x256xf32>
    %67 = arith.mulf %64, %66 : vector<4x256xf32>
    %c0_29 = arith.constant 0 : index
    %c0_30 = arith.constant 0 : index
    %68 = vector.load %arg7[%c0_29, %c0_30] : memref<36x256xf32, #tpu.memory_space<vmem>>, vector<4x256xf32>
    tpu.vector_store %arg7[%c0_29, %c0_30], %67 {strides = array<i32>} : memref<36x256xf32, #tpu.memory_space<vmem>>, vector<4x256xf32>,
    %c16_i32_31 = arith.constant 16 : i32
    %69 = tpu.dynamic_rotate %63 by %c16_i32_31 dim 1 : vector<4x256xf32>, i32 -> vector<4x256xf32>
    %70 = vector.extract_strided_slice %1 {offsets = [1, 0], sizes = [1, 256], strides = [1, 1]} : vector<9x256xf32> to vector<1x256xf32>
    %71 = vector.broadcast %70 : vector<1x256xf32> to vector<4x256xf32>
    %72 = arith.mulf %69, %71 : vector<4x256xf32>
    %c4_32 = arith.constant 4 : index
    %c0_33 = arith.constant 0 : index
    %73 = vector.load %arg7[%c4_32, %c0_33] : memref<36x256xf32, #tpu.memory_space<vmem>>, vector<4x256xf32>
    tpu.vector_store %arg7[%c4_32, %c0_33], %72 {strides = array<i32>} : memref<36x256xf32, #tpu.memory_space<vmem>>, vector<4x256xf32>,
    %c15_i32_34 = arith.constant 15 : i32
    %74 = tpu.dynamic_rotate %63 by %c15_i32_34 dim 1 : vector<4x256xf32>, i32 -> vector<4x256xf32>
    %75 = vector.extract_strided_slice %1 {offsets = [2, 0], sizes = [1, 256], strides = [1, 1]} : vector<9x256xf32> to vector<1x256xf32>
    %76 = vector.broadcast %75 : vector<1x256xf32> to vector<4x256xf32>
    %77 = arith.mulf %74, %76 : vector<4x256xf32>
    %c8_35 = arith.constant 8 : index
    %c0_36 = arith.constant 0 : index
    %78 = vector.load %arg7[%c8_35, %c0_36] : memref<36x256xf32, #tpu.memory_space<vmem>>, vector<4x256xf32>
    tpu.vector_store %arg7[%c8_35, %c0_36], %77 {strides = array<i32>} : memref<36x256xf32, #tpu.memory_space<vmem>>, vector<4x256xf32>,
    %c1_i32_37 = arith.constant 1 : i32
    %79 = tpu.dynamic_rotate %63 by %c1_i32_37 dim 1 : vector<4x256xf32>, i32 -> vector<4x256xf32>
    %80 = vector.extract_strided_slice %1 {offsets = [3, 0], sizes = [1, 256], strides = [1, 1]} : vector<9x256xf32> to vector<1x256xf32>
    %81 = vector.broadcast %80 : vector<1x256xf32> to vector<4x256xf32>
    %82 = arith.mulf %79, %81 : vector<4x256xf32>
    %c12_38 = arith.constant 12 : index
    %c0_39 = arith.constant 0 : index
    %83 = vector.load %arg7[%c12_38, %c0_39] : memref<36x256xf32, #tpu.memory_space<vmem>>, vector<4x256xf32>
    tpu.vector_store %arg7[%c12_38, %c0_39], %82 {strides = array<i32>} : memref<36x256xf32, #tpu.memory_space<vmem>>, vector<4x256xf32>,
    %c16_40 = arith.constant 16 : index
    %c0_41 = arith.constant 0 : index
    %84 = vector.load %arg7[%c16_40, %c0_41] : memref<36x256xf32, #tpu.memory_space<vmem>>, vector<4x256xf32>
    tpu.vector_store %arg7[%c16_40, %c0_41], %63 {strides = array<i32>} : memref<36x256xf32, #tpu.memory_space<vmem>>, vector<4x256xf32>,
    %c255_i32_42 = arith.constant 255 : i32
    %85 = tpu.dynamic_rotate %63 by %c255_i32_42 dim 1 : vector<4x256xf32>, i32 -> vector<4x256xf32>
    %86 = vector.extract_strided_slice %1 {offsets = [5, 0], sizes = [1, 256], strides = [1, 1]} : vector<9x256xf32> to vector<1x256xf32>
    %87 = vector.broadcast %86 : vector<1x256xf32> to vector<4x256xf32>
    %88 = arith.mulf %85, %87 : vector<4x256xf32>
    %c20_43 = arith.constant 20 : index
    %c0_44 = arith.constant 0 : index
    %89 = vector.load %arg7[%c20_43, %c0_44] : memref<36x256xf32, #tpu.memory_space<vmem>>, vector<4x256xf32>
    tpu.vector_store %arg7[%c20_43, %c0_44], %88 {strides = array<i32>} : memref<36x256xf32, #tpu.memory_space<vmem>>, vector<4x256xf32>,
    %c241_i32_45 = arith.constant 241 : i32
    %90 = tpu.dynamic_rotate %63 by %c241_i32_45 dim 1 : vector<4x256xf32>, i32 -> vector<4x256xf32>
    %91 = vector.extract_strided_slice %1 {offsets = [6, 0], sizes = [1, 256], strides = [1, 1]} : vector<9x256xf32> to vector<1x256xf32>
    %92 = vector.broadcast %91 : vector<1x256xf32> to vector<4x256xf32>
    %93 = arith.mulf %90, %92 : vector<4x256xf32>
    %c24_46 = arith.constant 24 : index
    %c0_47 = arith.constant 0 : index
    %94 = vector.load %arg7[%c24_46, %c0_47] : memref<36x256xf32, #tpu.memory_space<vmem>>, vector<4x256xf32>
    tpu.vector_store %arg7[%c24_46, %c0_47], %93 {strides = array<i32>} : memref<36x256xf32, #tpu.memory_space<vmem>>, vector<4x256xf32>,
    %c240_i32_48 = arith.constant 240 : i32
    %95 = tpu.dynamic_rotate %63 by %c240_i32_48 dim 1 : vector<4x256xf32>, i32 -> vector<4x256xf32>
    %96 = vector.extract_strided_slice %1 {offsets = [7, 0], sizes = [1, 256], strides = [1, 1]} : vector<9x256xf32> to vector<1x256xf32>
    %97 = vector.broadcast %96 : vector<1x256xf32> to vector<4x256xf32>
    %98 = arith.mulf %95, %97 : vector<4x256xf32>
    %c28_49 = arith.constant 28 : index
    %c0_50 = arith.constant 0 : index
    %99 = vector.load %arg7[%c28_49, %c0_50] : memref<36x256xf32, #tpu.memory_space<vmem>>, vector<4x256xf32>
    tpu.vector_store %arg7[%c28_49, %c0_50], %98 {strides = array<i32>} : memref<36x256xf32, #tpu.memory_space<vmem>>, vector<4x256xf32>,
    %c239_i32_51 = arith.constant 239 : i32
    %100 = tpu.dynamic_rotate %63 by %c239_i32_51 dim 1 : vector<4x256xf32>, i32 -> vector<4x256xf32>
    %101 = vector.extract_strided_slice %1 {offsets = [8, 0], sizes = [1, 256], strides = [1, 1]} : vector<9x256xf32> to vector<1x256xf32>
    %102 = vector.broadcast %101 : vector<1x256xf32> to vector<4x256xf32>
    %103 = arith.mulf %100, %102 : vector<4x256xf32>
    %c32_52 = arith.constant 32 : index
    %c0_53 = arith.constant 0 : index
    %104 = vector.load %arg7[%c32_52, %c0_53] : memref<36x256xf32, #tpu.memory_space<vmem>>, vector<4x256xf32>
    tpu.vector_store %arg7[%c32_52, %c0_53], %103 {strides = array<i32>} : memref<36x256xf32, #tpu.memory_space<vmem>>, vector<4x256xf32>,
    %c0_54 = arith.constant 0 : index
    %c0_55 = arith.constant 0 : index
    %105 = vector.load %arg7[%c0_54, %c0_55] : memref<36x256xf32, #tpu.memory_space<vmem>>, vector<36x256xf32>
    %cst_56 = arith.constant dense<0.000000e+00> : vector<2x256xf32>
    %106 = tpu.matmul %0, %105, %cst_56 {dimension_numbers = #tpu.dot_dimension_numbers<[1], [0], [0], [1], [0, 0, 1, 1], [], []>} : vector<2x36xf32>, vector<36x256xf32>, vector<2x256xf32> -> vector<2x256xf32>
    %107 = vector.broadcast %2 : vector<2x1xf32> to vector<2x256xf32>
    %108 = arith.addf %106, %107 : vector<2x256xf32>
    %c1_57 = arith.constant 1 : index
    %c0_58 = arith.constant 0 : index
    %c0_59 = arith.constant 0 : index
    %109 = vector.load %arg5[%c1_57, %c0_58, %c0_59] : memref<2x2x256xf32, #tpu.memory_space<vmem>>, vector<1x2x256xf32>
    %110 = vector.shape_cast %109 : vector<1x2x256xf32> to vector<2x256xf32>
    %111 = vector.shape_cast %108 : vector<2x256xf32> to vector<1x2x256xf32>
    tpu.vector_store %arg5[%c1_57, %c0_58, %c0_59], %111 {strides = array<i32>} : memref<2x2x256xf32, #tpu.memory_space<vmem>>, vector<1x2x256xf32>,
    %cst_60 = arith.constant dense<0.000000e+00> : vector<2xf32>
    %112 = vector.multi_reduction <add>, %108, %cst_60 [1] : vector<2x256xf32> to vector<2xf32>
    %113 = vector.shape_cast %112 : vector<2xf32> to vector<2x1xf32>
    %cst_61 = arith.constant 2.560000e+02 : f32
    %114 = vector.broadcast %cst_61 : f32 to vector<2x1xf32>
    %115 = arith.divf %113, %114 : vector<2x1xf32>
    %116 = vector.broadcast %115 : vector<2x1xf32> to vector<2x256xf32>
    %117 = arith.subf %108, %116 : vector<2x256xf32>
    %118 = arith.mulf %117, %117 : vector<2x256xf32>
    %cst_62 = arith.constant dense<0.000000e+00> : vector<2xf32>
    %119 = vector.multi_reduction <add>, %118, %cst_62 [1] : vector<2x256xf32> to vector<2xf32>
    %120 = vector.shape_cast %119 : vector<2xf32> to vector<2x1xf32>
    %121 = arith.subf %115, %56 : vector<2x1xf32>
    %cst_63 = arith.constant 5.000000e-01 : f32
    %122 = vector.broadcast %cst_63 : f32 to vector<2x1xf32>
    %123 = arith.mulf %121, %122 : vector<2x1xf32>
    %124 = arith.addf %56, %123 : vector<2x1xf32>
    %125 = arith.addf %61, %120 : vector<2x1xf32>
    %126 = arith.mulf %121, %121 : vector<2x1xf32>
    %cst_64 = arith.constant 1.280000e+02 : f32
    %127 = vector.broadcast %cst_64 : f32 to vector<2x1xf32>
    %128 = arith.mulf %126, %127 : vector<2x1xf32>
    %129 = arith.addf %125, %128 : vector<2x1xf32>
    %c0_65 = arith.constant 0 : index
    %c0_66 = arith.constant 0 : index
    %c0_67 = arith.constant 0 : index
    %130 = vector.load %arg6[%c0_65, %c0_66, %c0_67] : memref<1x2x2xf32, #tpu.memory_space<vmem>>, vector<1x2x1xf32>
    %131 = vector.shape_cast %130 : vector<1x2x1xf32> to vector<2x1xf32>
    %132 = vector.shape_cast %124 : vector<2x1xf32> to vector<1x2x1xf32>
    tpu.vector_store %arg6[%c0_65, %c0_66, %c0_67], %132 {strides = array<i32>} : memref<1x2x2xf32, #tpu.memory_space<vmem>>, vector<1x2x1xf32>,
    %c0_68 = arith.constant 0 : index
    %c0_69 = arith.constant 0 : index
    %c1_70 = arith.constant 1 : index
    %133 = vector.load %arg6[%c0_68, %c0_69, %c1_70] : memref<1x2x2xf32, #tpu.memory_space<vmem>>, vector<1x2x1xf32>
    %134 = vector.shape_cast %133 : vector<1x2x1xf32> to vector<2x1xf32>
    %135 = vector.shape_cast %129 : vector<2x1xf32> to vector<1x2x1xf32>
    tpu.vector_store %arg6[%c0_68, %c0_69, %c1_70], %135 {strides = array<i32>} : memref<1x2x2xf32, #tpu.memory_space<vmem>>, vector<1x2x1xf32>,
    return
  }
  func.func @transform_0(%arg0: i32) -> (i32, i32, i32) {
    %c0_i32 = arith.constant 0 : i32
    %c0_i32_0 = arith.constant 0 : i32
    %c0_i32_1 = arith.constant 0 : i32
    return %arg0, %c0_i32, %c0_i32_0 : i32, i32, i32
  }
  func.func @transform_1(%arg0: i32) -> (i32, i32) {
    %c0_i32 = arith.constant 0 : i32
    %c0_i32_0 = arith.constant 0 : i32
    %c0_i32_1 = arith.constant 0 : i32
    return %c0_i32, %c0_i32_0 : i32, i32
  }
  func.func @transform_2(%arg0: i32) -> (i32, i32) {
    %c0_i32 = arith.constant 0 : i32
    %c0_i32_0 = arith.constant 0 : i32
    %c0_i32_1 = arith.constant 0 : i32
    return %c0_i32, %c0_i32_0 : i32, i32
  }
  func.func @transform_3(%arg0: i32) -> (i32, i32) {
    %c0_i32 = arith.constant 0 : i32
    %c0_i32_0 = arith.constant 0 : i32
    %c0_i32_1 = arith.constant 0 : i32
    return %c0_i32, %c0_i32_0 : i32, i32
  }
  func.func @transform_4(%arg0: i32) -> (i32, i32, i32) {
    %c0_i32 = arith.constant 0 : i32
    %c0_i32_0 = arith.constant 0 : i32
    %c0_i32_1 = arith.constant 0 : i32
    return %arg0, %c0_i32, %c0_i32_0 : i32, i32, i32
  }
  func.func @transform_5(%arg0: i32) -> (i32, i32, i32) {
    %c0_i32 = arith.constant 0 : i32
    %c0_i32_0 = arith.constant 0 : i32
    %c0_i32_1 = arith.constant 0 : i32
    return %arg0, %c0_i32, %c0_i32_0 : i32, i32, i32
  }
}

module attributes {stable_mosaic.version = 11 : i64} {
  func.func @conv2_kernel(%arg0: i32, %arg1: memref<2x2x256xf32, #tpu.memory_space<vmem>>, %arg2: memref<2x1xf32, #tpu.memory_space<vmem>>, %arg3: memref<2x1xf32, #tpu.memory_space<vmem>>, %arg4: memref<4x18xf32, #tpu.memory_space<vmem>>, %arg5: memref<4x1xf32, #tpu.memory_space<vmem>>, %arg6: memref<9x256xf32, #tpu.memory_space<vmem>>, %arg7: memref<2x4x256xf32, #tpu.memory_space<vmem>>, %arg8: memref<18x256xf32, #tpu.memory_space<vmem>>) attributes {dimension_semantics = [#tpu.dimension_semantics<parallel>], iteration_bounds = array<i64: 1>, scalar_prefetch = 0 : i64, scratch_operands = 1 : i64, tpu.core_type = #tpu.core_type<tc>, window_params = [{transform_indices = @transform_0, window_bounds = array<i64: 2, 2, 256>}, {pipeline_mode = #tpu.pipeline_mode<synchronous>, transform_indices = @transform_1, window_bounds = array<i64: 2, 1>}, {pipeline_mode = #tpu.pipeline_mode<synchronous>, transform_indices = @transform_2, window_bounds = array<i64: 2, 1>}, {pipeline_mode = #tpu.pipeline_mode<synchronous>, transform_indices = @transform_3, window_bounds = array<i64: 4, 18>}, {pipeline_mode = #tpu.pipeline_mode<synchronous>, transform_indices = @transform_4, window_bounds = array<i64: 4, 1>}, {pipeline_mode = #tpu.pipeline_mode<synchronous>, transform_indices = @transform_5, window_bounds = array<i64: 9, 256>}, {transform_indices = @transform_6, window_bounds = array<i64: 2, 4, 256>}]} {
    %c0 = arith.constant 0 : index
    %c0_0 = arith.constant 0 : index
    %0 = vector.load %arg4[%c0, %c0_0] : memref<4x18xf32, #tpu.memory_space<vmem>>, vector<4x18xf32>
    %c0_1 = arith.constant 0 : index
    %c0_2 = arith.constant 0 : index
    %1 = vector.load %arg6[%c0_1, %c0_2] : memref<9x256xf32, #tpu.memory_space<vmem>>, vector<9x256xf32>
    %c0_3 = arith.constant 0 : index
    %c0_4 = arith.constant 0 : index
    %2 = vector.load %arg5[%c0_3, %c0_4] : memref<4x1xf32, #tpu.memory_space<vmem>>, vector<4x1xf32>
    %c0_5 = arith.constant 0 : index
    %c0_6 = arith.constant 0 : index
    %3 = vector.load %arg2[%c0_5, %c0_6] : memref<2x1xf32, #tpu.memory_space<vmem>>, vector<2x1xf32>
    %c0_7 = arith.constant 0 : index
    %c0_8 = arith.constant 0 : index
    %4 = vector.load %arg3[%c0_7, %c0_8] : memref<2x1xf32, #tpu.memory_space<vmem>>, vector<2x1xf32>
    %c0_9 = arith.constant 0 : index
    %c0_10 = arith.constant 0 : index
    %c0_11 = arith.constant 0 : index
    %5 = vector.load %arg1[%c0_9, %c0_10, %c0_11] : memref<2x2x256xf32, #tpu.memory_space<vmem>>, vector<1x2x256xf32>
    %6 = vector.shape_cast %5 : vector<1x2x256xf32> to vector<2x256xf32>
    %7 = vector.broadcast %3 : vector<2x1xf32> to vector<2x256xf32>
    %8 = arith.mulf %6, %7 : vector<2x256xf32>
    %9 = vector.broadcast %4 : vector<2x1xf32> to vector<2x256xf32>
    %10 = arith.addf %8, %9 : vector<2x256xf32>
    %cst = arith.constant 0.000000e+00 : f32
    %11 = vector.broadcast %cst : f32 to vector<2x256xf32>
    %12 = arith.maximumf %10, %11 : vector<2x256xf32>
    %c17_i32 = arith.constant 17 : i32
    %13 = tpu.dynamic_rotate %12 by %c17_i32 dim 1 : vector<2x256xf32>, i32 -> vector<2x256xf32>
    %14 = vector.extract_strided_slice %1 {offsets = [0, 0], sizes = [1, 256], strides = [1, 1]} : vector<9x256xf32> to vector<1x256xf32>
    %15 = vector.broadcast %14 : vector<1x256xf32> to vector<2x256xf32>
    %16 = arith.mulf %13, %15 : vector<2x256xf32>
    %c0_12 = arith.constant 0 : index
    %c0_13 = arith.constant 0 : index
    %17 = vector.load %arg8[%c0_12, %c0_13] : memref<18x256xf32, #tpu.memory_space<vmem>>, vector<2x256xf32>
    tpu.vector_store %arg8[%c0_12, %c0_13], %16 {strides = array<i32>} : memref<18x256xf32, #tpu.memory_space<vmem>>, vector<2x256xf32>,
    %c16_i32 = arith.constant 16 : i32
    %18 = tpu.dynamic_rotate %12 by %c16_i32 dim 1 : vector<2x256xf32>, i32 -> vector<2x256xf32>
    %19 = vector.extract_strided_slice %1 {offsets = [1, 0], sizes = [1, 256], strides = [1, 1]} : vector<9x256xf32> to vector<1x256xf32>
    %20 = vector.broadcast %19 : vector<1x256xf32> to vector<2x256xf32>
    %21 = arith.mulf %18, %20 : vector<2x256xf32>
    %c2 = arith.constant 2 : index
    %c0_14 = arith.constant 0 : index
    %22 = vector.load %arg8[%c2, %c0_14] : memref<18x256xf32, #tpu.memory_space<vmem>>, vector<2x256xf32>
    tpu.vector_store %arg8[%c2, %c0_14], %21 {strides = array<i32>} : memref<18x256xf32, #tpu.memory_space<vmem>>, vector<2x256xf32>,
    %c15_i32 = arith.constant 15 : i32
    %23 = tpu.dynamic_rotate %12 by %c15_i32 dim 1 : vector<2x256xf32>, i32 -> vector<2x256xf32>
    %24 = vector.extract_strided_slice %1 {offsets = [2, 0], sizes = [1, 256], strides = [1, 1]} : vector<9x256xf32> to vector<1x256xf32>
    %25 = vector.broadcast %24 : vector<1x256xf32> to vector<2x256xf32>
    %26 = arith.mulf %23, %25 : vector<2x256xf32>
    %c4 = arith.constant 4 : index
    %c0_15 = arith.constant 0 : index
    %27 = vector.load %arg8[%c4, %c0_15] : memref<18x256xf32, #tpu.memory_space<vmem>>, vector<2x256xf32>
    tpu.vector_store %arg8[%c4, %c0_15], %26 {strides = array<i32>} : memref<18x256xf32, #tpu.memory_space<vmem>>, vector<2x256xf32>,
    %c1_i32 = arith.constant 1 : i32
    %28 = tpu.dynamic_rotate %12 by %c1_i32 dim 1 : vector<2x256xf32>, i32 -> vector<2x256xf32>
    %29 = vector.extract_strided_slice %1 {offsets = [3, 0], sizes = [1, 256], strides = [1, 1]} : vector<9x256xf32> to vector<1x256xf32>
    %30 = vector.broadcast %29 : vector<1x256xf32> to vector<2x256xf32>
    %31 = arith.mulf %28, %30 : vector<2x256xf32>
    %c6 = arith.constant 6 : index
    %c0_16 = arith.constant 0 : index
    %32 = vector.load %arg8[%c6, %c0_16] : memref<18x256xf32, #tpu.memory_space<vmem>>, vector<2x256xf32>
    tpu.vector_store %arg8[%c6, %c0_16], %31 {strides = array<i32>} : memref<18x256xf32, #tpu.memory_space<vmem>>, vector<2x256xf32>,
    %c8 = arith.constant 8 : index
    %c0_17 = arith.constant 0 : index
    %33 = vector.load %arg8[%c8, %c0_17] : memref<18x256xf32, #tpu.memory_space<vmem>>, vector<2x256xf32>
    tpu.vector_store %arg8[%c8, %c0_17], %12 {strides = array<i32>} : memref<18x256xf32, #tpu.memory_space<vmem>>, vector<2x256xf32>,
    %c255_i32 = arith.constant 255 : i32
    %34 = tpu.dynamic_rotate %12 by %c255_i32 dim 1 : vector<2x256xf32>, i32 -> vector<2x256xf32>
    %35 = vector.extract_strided_slice %1 {offsets = [5, 0], sizes = [1, 256], strides = [1, 1]} : vector<9x256xf32> to vector<1x256xf32>
    %36 = vector.broadcast %35 : vector<1x256xf32> to vector<2x256xf32>
    %37 = arith.mulf %34, %36 : vector<2x256xf32>
    %c10 = arith.constant 10 : index
    %c0_18 = arith.constant 0 : index
    %38 = vector.load %arg8[%c10, %c0_18] : memref<18x256xf32, #tpu.memory_space<vmem>>, vector<2x256xf32>
    tpu.vector_store %arg8[%c10, %c0_18], %37 {strides = array<i32>} : memref<18x256xf32, #tpu.memory_space<vmem>>, vector<2x256xf32>,
    %c241_i32 = arith.constant 241 : i32
    %39 = tpu.dynamic_rotate %12 by %c241_i32 dim 1 : vector<2x256xf32>, i32 -> vector<2x256xf32>
    %40 = vector.extract_strided_slice %1 {offsets = [6, 0], sizes = [1, 256], strides = [1, 1]} : vector<9x256xf32> to vector<1x256xf32>
    %41 = vector.broadcast %40 : vector<1x256xf32> to vector<2x256xf32>
    %42 = arith.mulf %39, %41 : vector<2x256xf32>
    %c12 = arith.constant 12 : index
    %c0_19 = arith.constant 0 : index
    %43 = vector.load %arg8[%c12, %c0_19] : memref<18x256xf32, #tpu.memory_space<vmem>>, vector<2x256xf32>
    tpu.vector_store %arg8[%c12, %c0_19], %42 {strides = array<i32>} : memref<18x256xf32, #tpu.memory_space<vmem>>, vector<2x256xf32>,
    %c240_i32 = arith.constant 240 : i32
    %44 = tpu.dynamic_rotate %12 by %c240_i32 dim 1 : vector<2x256xf32>, i32 -> vector<2x256xf32>
    %45 = vector.extract_strided_slice %1 {offsets = [7, 0], sizes = [1, 256], strides = [1, 1]} : vector<9x256xf32> to vector<1x256xf32>
    %46 = vector.broadcast %45 : vector<1x256xf32> to vector<2x256xf32>
    %47 = arith.mulf %44, %46 : vector<2x256xf32>
    %c14 = arith.constant 14 : index
    %c0_20 = arith.constant 0 : index
    %48 = vector.load %arg8[%c14, %c0_20] : memref<18x256xf32, #tpu.memory_space<vmem>>, vector<2x256xf32>
    tpu.vector_store %arg8[%c14, %c0_20], %47 {strides = array<i32>} : memref<18x256xf32, #tpu.memory_space<vmem>>, vector<2x256xf32>,
    %c239_i32 = arith.constant 239 : i32
    %49 = tpu.dynamic_rotate %12 by %c239_i32 dim 1 : vector<2x256xf32>, i32 -> vector<2x256xf32>
    %50 = vector.extract_strided_slice %1 {offsets = [8, 0], sizes = [1, 256], strides = [1, 1]} : vector<9x256xf32> to vector<1x256xf32>
    %51 = vector.broadcast %50 : vector<1x256xf32> to vector<2x256xf32>
    %52 = arith.mulf %49, %51 : vector<2x256xf32>
    %c16 = arith.constant 16 : index
    %c0_21 = arith.constant 0 : index
    %53 = vector.load %arg8[%c16, %c0_21] : memref<18x256xf32, #tpu.memory_space<vmem>>, vector<2x256xf32>
    tpu.vector_store %arg8[%c16, %c0_21], %52 {strides = array<i32>} : memref<18x256xf32, #tpu.memory_space<vmem>>, vector<2x256xf32>,
    %c0_22 = arith.constant 0 : index
    %c0_23 = arith.constant 0 : index
    %54 = vector.load %arg8[%c0_22, %c0_23] : memref<18x256xf32, #tpu.memory_space<vmem>>, vector<18x256xf32>
    %cst_24 = arith.constant dense<0.000000e+00> : vector<4x256xf32>
    %55 = tpu.matmul %0, %54, %cst_24 {dimension_numbers = #tpu.dot_dimension_numbers<[1], [0], [0], [1], [0, 0, 1, 1], [], []>} : vector<4x18xf32>, vector<18x256xf32>, vector<4x256xf32> -> vector<4x256xf32>
    %56 = vector.broadcast %2 : vector<4x1xf32> to vector<4x256xf32>
    %57 = arith.addf %55, %56 : vector<4x256xf32>
    %c0_25 = arith.constant 0 : index
    %c0_26 = arith.constant 0 : index
    %c0_27 = arith.constant 0 : index
    %58 = vector.load %arg7[%c0_25, %c0_26, %c0_27] : memref<2x4x256xf32, #tpu.memory_space<vmem>>, vector<1x4x256xf32>
    %59 = vector.shape_cast %58 : vector<1x4x256xf32> to vector<4x256xf32>
    %60 = vector.shape_cast %57 : vector<4x256xf32> to vector<1x4x256xf32>
    tpu.vector_store %arg7[%c0_25, %c0_26, %c0_27], %60 {strides = array<i32>} : memref<2x4x256xf32, #tpu.memory_space<vmem>>, vector<1x4x256xf32>,
    %c1 = arith.constant 1 : index
    %c0_28 = arith.constant 0 : index
    %c0_29 = arith.constant 0 : index
    %61 = vector.load %arg1[%c1, %c0_28, %c0_29] : memref<2x2x256xf32, #tpu.memory_space<vmem>>, vector<1x2x256xf32>
    %62 = vector.shape_cast %61 : vector<1x2x256xf32> to vector<2x256xf32>
    %63 = vector.broadcast %3 : vector<2x1xf32> to vector<2x256xf32>
    %64 = arith.mulf %62, %63 : vector<2x256xf32>
    %65 = vector.broadcast %4 : vector<2x1xf32> to vector<2x256xf32>
    %66 = arith.addf %64, %65 : vector<2x256xf32>
    %cst_30 = arith.constant 0.000000e+00 : f32
    %67 = vector.broadcast %cst_30 : f32 to vector<2x256xf32>
    %68 = arith.maximumf %66, %67 : vector<2x256xf32>
    %c17_i32_31 = arith.constant 17 : i32
    %69 = tpu.dynamic_rotate %68 by %c17_i32_31 dim 1 : vector<2x256xf32>, i32 -> vector<2x256xf32>
    %70 = vector.extract_strided_slice %1 {offsets = [0, 0], sizes = [1, 256], strides = [1, 1]} : vector<9x256xf32> to vector<1x256xf32>
    %71 = vector.broadcast %70 : vector<1x256xf32> to vector<2x256xf32>
    %72 = arith.mulf %69, %71 : vector<2x256xf32>
    %c0_32 = arith.constant 0 : index
    %c0_33 = arith.constant 0 : index
    %73 = vector.load %arg8[%c0_32, %c0_33] : memref<18x256xf32, #tpu.memory_space<vmem>>, vector<2x256xf32>
    tpu.vector_store %arg8[%c0_32, %c0_33], %72 {strides = array<i32>} : memref<18x256xf32, #tpu.memory_space<vmem>>, vector<2x256xf32>,
    %c16_i32_34 = arith.constant 16 : i32
    %74 = tpu.dynamic_rotate %68 by %c16_i32_34 dim 1 : vector<2x256xf32>, i32 -> vector<2x256xf32>
    %75 = vector.extract_strided_slice %1 {offsets = [1, 0], sizes = [1, 256], strides = [1, 1]} : vector<9x256xf32> to vector<1x256xf32>
    %76 = vector.broadcast %75 : vector<1x256xf32> to vector<2x256xf32>
    %77 = arith.mulf %74, %76 : vector<2x256xf32>
    %c2_35 = arith.constant 2 : index
    %c0_36 = arith.constant 0 : index
    %78 = vector.load %arg8[%c2_35, %c0_36] : memref<18x256xf32, #tpu.memory_space<vmem>>, vector<2x256xf32>
    tpu.vector_store %arg8[%c2_35, %c0_36], %77 {strides = array<i32>} : memref<18x256xf32, #tpu.memory_space<vmem>>, vector<2x256xf32>,
    %c15_i32_37 = arith.constant 15 : i32
    %79 = tpu.dynamic_rotate %68 by %c15_i32_37 dim 1 : vector<2x256xf32>, i32 -> vector<2x256xf32>
    %80 = vector.extract_strided_slice %1 {offsets = [2, 0], sizes = [1, 256], strides = [1, 1]} : vector<9x256xf32> to vector<1x256xf32>
    %81 = vector.broadcast %80 : vector<1x256xf32> to vector<2x256xf32>
    %82 = arith.mulf %79, %81 : vector<2x256xf32>
    %c4_38 = arith.constant 4 : index
    %c0_39 = arith.constant 0 : index
    %83 = vector.load %arg8[%c4_38, %c0_39] : memref<18x256xf32, #tpu.memory_space<vmem>>, vector<2x256xf32>
    tpu.vector_store %arg8[%c4_38, %c0_39], %82 {strides = array<i32>} : memref<18x256xf32, #tpu.memory_space<vmem>>, vector<2x256xf32>,
    %c1_i32_40 = arith.constant 1 : i32
    %84 = tpu.dynamic_rotate %68 by %c1_i32_40 dim 1 : vector<2x256xf32>, i32 -> vector<2x256xf32>
    %85 = vector.extract_strided_slice %1 {offsets = [3, 0], sizes = [1, 256], strides = [1, 1]} : vector<9x256xf32> to vector<1x256xf32>
    %86 = vector.broadcast %85 : vector<1x256xf32> to vector<2x256xf32>
    %87 = arith.mulf %84, %86 : vector<2x256xf32>
    %c6_41 = arith.constant 6 : index
    %c0_42 = arith.constant 0 : index
    %88 = vector.load %arg8[%c6_41, %c0_42] : memref<18x256xf32, #tpu.memory_space<vmem>>, vector<2x256xf32>
    tpu.vector_store %arg8[%c6_41, %c0_42], %87 {strides = array<i32>} : memref<18x256xf32, #tpu.memory_space<vmem>>, vector<2x256xf32>,
    %c8_43 = arith.constant 8 : index
    %c0_44 = arith.constant 0 : index
    %89 = vector.load %arg8[%c8_43, %c0_44] : memref<18x256xf32, #tpu.memory_space<vmem>>, vector<2x256xf32>
    tpu.vector_store %arg8[%c8_43, %c0_44], %68 {strides = array<i32>} : memref<18x256xf32, #tpu.memory_space<vmem>>, vector<2x256xf32>,
    %c255_i32_45 = arith.constant 255 : i32
    %90 = tpu.dynamic_rotate %68 by %c255_i32_45 dim 1 : vector<2x256xf32>, i32 -> vector<2x256xf32>
    %91 = vector.extract_strided_slice %1 {offsets = [5, 0], sizes = [1, 256], strides = [1, 1]} : vector<9x256xf32> to vector<1x256xf32>
    %92 = vector.broadcast %91 : vector<1x256xf32> to vector<2x256xf32>
    %93 = arith.mulf %90, %92 : vector<2x256xf32>
    %c10_46 = arith.constant 10 : index
    %c0_47 = arith.constant 0 : index
    %94 = vector.load %arg8[%c10_46, %c0_47] : memref<18x256xf32, #tpu.memory_space<vmem>>, vector<2x256xf32>
    tpu.vector_store %arg8[%c10_46, %c0_47], %93 {strides = array<i32>} : memref<18x256xf32, #tpu.memory_space<vmem>>, vector<2x256xf32>,
    %c241_i32_48 = arith.constant 241 : i32
    %95 = tpu.dynamic_rotate %68 by %c241_i32_48 dim 1 : vector<2x256xf32>, i32 -> vector<2x256xf32>
    %96 = vector.extract_strided_slice %1 {offsets = [6, 0], sizes = [1, 256], strides = [1, 1]} : vector<9x256xf32> to vector<1x256xf32>
    %97 = vector.broadcast %96 : vector<1x256xf32> to vector<2x256xf32>
    %98 = arith.mulf %95, %97 : vector<2x256xf32>
    %c12_49 = arith.constant 12 : index
    %c0_50 = arith.constant 0 : index
    %99 = vector.load %arg8[%c12_49, %c0_50] : memref<18x256xf32, #tpu.memory_space<vmem>>, vector<2x256xf32>
    tpu.vector_store %arg8[%c12_49, %c0_50], %98 {strides = array<i32>} : memref<18x256xf32, #tpu.memory_space<vmem>>, vector<2x256xf32>,
    %c240_i32_51 = arith.constant 240 : i32
    %100 = tpu.dynamic_rotate %68 by %c240_i32_51 dim 1 : vector<2x256xf32>, i32 -> vector<2x256xf32>
    %101 = vector.extract_strided_slice %1 {offsets = [7, 0], sizes = [1, 256], strides = [1, 1]} : vector<9x256xf32> to vector<1x256xf32>
    %102 = vector.broadcast %101 : vector<1x256xf32> to vector<2x256xf32>
    %103 = arith.mulf %100, %102 : vector<2x256xf32>
    %c14_52 = arith.constant 14 : index
    %c0_53 = arith.constant 0 : index
    %104 = vector.load %arg8[%c14_52, %c0_53] : memref<18x256xf32, #tpu.memory_space<vmem>>, vector<2x256xf32>
    tpu.vector_store %arg8[%c14_52, %c0_53], %103 {strides = array<i32>} : memref<18x256xf32, #tpu.memory_space<vmem>>, vector<2x256xf32>,
    %c239_i32_54 = arith.constant 239 : i32
    %105 = tpu.dynamic_rotate %68 by %c239_i32_54 dim 1 : vector<2x256xf32>, i32 -> vector<2x256xf32>
    %106 = vector.extract_strided_slice %1 {offsets = [8, 0], sizes = [1, 256], strides = [1, 1]} : vector<9x256xf32> to vector<1x256xf32>
    %107 = vector.broadcast %106 : vector<1x256xf32> to vector<2x256xf32>
    %108 = arith.mulf %105, %107 : vector<2x256xf32>
    %c16_55 = arith.constant 16 : index
    %c0_56 = arith.constant 0 : index
    %109 = vector.load %arg8[%c16_55, %c0_56] : memref<18x256xf32, #tpu.memory_space<vmem>>, vector<2x256xf32>
    tpu.vector_store %arg8[%c16_55, %c0_56], %108 {strides = array<i32>} : memref<18x256xf32, #tpu.memory_space<vmem>>, vector<2x256xf32>,
    %c0_57 = arith.constant 0 : index
    %c0_58 = arith.constant 0 : index
    %110 = vector.load %arg8[%c0_57, %c0_58] : memref<18x256xf32, #tpu.memory_space<vmem>>, vector<18x256xf32>
    %cst_59 = arith.constant dense<0.000000e+00> : vector<4x256xf32>
    %111 = tpu.matmul %0, %110, %cst_59 {dimension_numbers = #tpu.dot_dimension_numbers<[1], [0], [0], [1], [0, 0, 1, 1], [], []>} : vector<4x18xf32>, vector<18x256xf32>, vector<4x256xf32> -> vector<4x256xf32>
    %112 = vector.broadcast %2 : vector<4x1xf32> to vector<4x256xf32>
    %113 = arith.addf %111, %112 : vector<4x256xf32>
    %c1_60 = arith.constant 1 : index
    %c0_61 = arith.constant 0 : index
    %c0_62 = arith.constant 0 : index
    %114 = vector.load %arg7[%c1_60, %c0_61, %c0_62] : memref<2x4x256xf32, #tpu.memory_space<vmem>>, vector<1x4x256xf32>
    %115 = vector.shape_cast %114 : vector<1x4x256xf32> to vector<4x256xf32>
    %116 = vector.shape_cast %113 : vector<4x256xf32> to vector<1x4x256xf32>
    tpu.vector_store %arg7[%c1_60, %c0_61, %c0_62], %116 {strides = array<i32>} : memref<2x4x256xf32, #tpu.memory_space<vmem>>, vector<1x4x256xf32>,
    return
  }
  func.func @transform_0(%arg0: i32) -> (i32, i32, i32) {
    %c0_i32 = arith.constant 0 : i32
    %c0_i32_0 = arith.constant 0 : i32
    %c0_i32_1 = arith.constant 0 : i32
    return %arg0, %c0_i32, %c0_i32_0 : i32, i32, i32
  }
  func.func @transform_1(%arg0: i32) -> (i32, i32) {
    %c0_i32 = arith.constant 0 : i32
    %c0_i32_0 = arith.constant 0 : i32
    %c0_i32_1 = arith.constant 0 : i32
    return %c0_i32, %c0_i32_0 : i32, i32
  }
  func.func @transform_2(%arg0: i32) -> (i32, i32) {
    %c0_i32 = arith.constant 0 : i32
    %c0_i32_0 = arith.constant 0 : i32
    %c0_i32_1 = arith.constant 0 : i32
    return %c0_i32, %c0_i32_0 : i32, i32
  }
  func.func @transform_3(%arg0: i32) -> (i32, i32) {
    %c0_i32 = arith.constant 0 : i32
    %c0_i32_0 = arith.constant 0 : i32
    %c0_i32_1 = arith.constant 0 : i32
    return %c0_i32, %c0_i32_0 : i32, i32
  }
  func.func @transform_4(%arg0: i32) -> (i32, i32) {
    %c0_i32 = arith.constant 0 : i32
    %c0_i32_0 = arith.constant 0 : i32
    %c0_i32_1 = arith.constant 0 : i32
    return %c0_i32, %c0_i32_0 : i32, i32
  }
  func.func @transform_5(%arg0: i32) -> (i32, i32) {
    %c0_i32 = arith.constant 0 : i32
    %c0_i32_0 = arith.constant 0 : i32
    %c0_i32_1 = arith.constant 0 : i32
    return %c0_i32, %c0_i32_0 : i32, i32
  }
  func.func @transform_6(%arg0: i32) -> (i32, i32, i32) {
    %c0_i32 = arith.constant 0 : i32
    %c0_i32_0 = arith.constant 0 : i32
    %c0_i32_1 = arith.constant 0 : i32
    return %arg0, %c0_i32, %c0_i32_0 : i32, i32, i32
  }
}

</mosaic_0001>

<bundles_post_ra>
// kernel: outconv2_pallas.2
= control target key start
LH: loop header
LB: loop body
LE: loop exit
PB: predicated region body
PF: predicated region fallthrough
CT: control target
= control target key end

     0   :  { %s621_s20 = smov 1   ;;  %s622_s21 = smov 16   ;;  %v628_v4 = vmov 0.0   ;;  %v630_v5 = vmov 0   ;;  %v33_v7 = vlaneseq  ;;  %vm228_vm8 = vcmask 1043456   ;;  %s892_s0 = inlined_call_operand.vmem [shape: f32[2,4,256], index: 0, kind: input, shape index: {}]   ;;  %s893_s2 = inlined_call_operand.vmem [shape: f32[2,1], index: 2, kind: input, shape index: {}]   ;;  %s894_s3 = inlined_call_operand.vmem [shape: f32[9,256], index: 3, kind: input, shape index: {}]   ;;  %s895_s1 = inlined_call_operand.vmem [shape: f32[2,36], index: 1, kind: input, shape index: {}]   ;;  %s896_s4 = inlined_call_operand.vmem [shape: f32[2,2,256], index: 4, kind: output, shape index: {0}]   ;;  %s897_s5 = inlined_call_operand.vmem [shape: f32[1,2,2], index: 5, kind: output, shape index: {1}]  }
   0x1   :  { %v25_v0 = vld [vmem:[%s892_s0] sm:$0xff]  ;;  %s623_s22 = smov 17   ;;  %s624_s23 = smov 15   ;;  %v667_v2 = vld [vmem:[%s892_s0 + $0x8] sm:$0xff]  ;;  %299 = vmatprep.mubr.f32.mxu0 %v628_v4  ;;  %526 = vmatprep.mubr.f32.mxu1 %v628_v4  ;;  %vm224_vm9 = vcmask 293888   ;;  %vm318_vm10 = vcmask 1041408  }
   0x2   :  { %94 = vrot.lane.b32.xlu1 %v25_v0, %s621_s20  ;;  %119 = vst [vmem:[#allocation2 + $0x20] sm:$0xf] %v25_v0  ;;  %50 = vrot.lane.b32.xlu0 %v25_v0, %s622_s21  ;;  %v27_v1 = vcombine.high %v25_v0, %v25_v0  ;;  %s625_s24 = smov 127   ;;  %s626_s25 = smov 112   ;;  %v671_v3 = vcombine.high %v667_v2, %v667_v2  ;;  %v24_v6 = vld [vmem:[%s893_s2] sm:$0x3] }
   0x3   :  { %s627_s28 = smov 113   ;;  %s629_s0 = smov 111   ;;  %618 = vset.pattern.permute.xlu0 %v630_v5  ;;  %v692_v8 = vshrl.u32 %v33_v7, 7  ;;  %v694_v9 = vand.u32 127, %v33_v7  ;;  %v701_v12 = vld [vmem:[%s894_s3] sm:$0xff]  ;;  %v706_v13 = vld [vmem:[%s894_s3 + $0x8] sm:$0xff] }
   0x4   :  { %120 = vst [vmem:[#allocation2 + $0x28] sm:$0xf] %v27_v1  ;;  %vm568_vm11 = vcmask 1024   ;;  %vm570_vm12 = vcmask 9224  }
   0x5   :  { %v103_v10 = vsub.s32 3, %v692_v8  ;;  %v59_v11 = vsub.s32 1, %v692_v8  ;;  %v40_v16 = vsub.s32 0, %v692_v8  ;;  %vm98_vm0 = vcmp.lt.s32.totalorder %v694_v9, 1 }
   0x6   :  { %96 = vrot.lane.b32.xlu1 %v27_v1, %s621_s20  ;;  %52 = vrot.lane.b32.xlu0 %v27_v1, %s622_s21  ;;  %vm54_vm1 = vcmp.lt.s32.totalorder %v694_v9, 16  ;;  %vm35_vm2 = vcmp.lt.s32.totalorder %v694_v9, 17  ;;  %v84_v25 = vsub.s32 2, %v692_v8  ;;  %vm79_vm3 = vcmp.lt.s32.totalorder %v694_v9, 15 }
   0x7   :  { %v712_v17 = vrot.slane %v701_v12, %v103_v10  ;;  %v715_v18 = vrot.slane %v706_v13, %v103_v10  ;;  %v718_v19 = vrot.slane %v701_v12, %v59_v11  ;;  %v721_v20 = vrot.slane %v706_v13, %v59_v11 }
   0x8   :  { %v725_v23 = vrot.slane %v701_v12, %v40_v16  ;;  %v728_v24 = vrot.slane %v706_v13, %v40_v16  ;;  %v749_v42 = vrot.slane %v701_v12, %v84_v25  ;;  %v754_v45 = vrot.slane %v706_v13, %v84_v25 }
   0x9   :  { %v130_v46 = vsub.s32 5, %v692_v8  ;;  %vm125_vm4 = vcmp.lt.s32.totalorder %v694_v9, 127  ;;  %v174_v51 = vsub.s32 7, %v692_v8  ;;  %vm169_vm5 = vcmp.lt.s32.totalorder %v694_v9, 112 }
   0xa   :  { %31 = vrot.lane.b32.xlu1 %v27_v1, %s623_s22  ;;  %29 = vrot.lane.b32.xlu0 %v25_v0, %s623_s22  ;;  %vm150_vm6 = vcmp.lt.s32.totalorder %v694_v9, 113  ;;  %vm194_vm7 = vcmp.lt.s32.totalorder %v694_v9, 111 }
   0xb   :  { %v766_v54 = vrot.slane %v701_v12, %v130_v46  ;;  %v769_v55 = vrot.slane %v706_v13, %v130_v46  ;;  %v777_v60 = vrot.slane %v701_v12, %v174_v51  ;;  %v782_v63 = vrot.slane %v706_v13, %v174_v51 }
   0xe   :  { %77 = vrot.lane.b32.xlu1 %v27_v1, %s624_s23  ;;  %75 = vrot.lane.b32.xlu0 %v25_v0, %s624_s23 }
  0x12   :  { %123 = vrot.lane.b32.xlu1 %v27_v1, %s625_s24  ;;  %121 = vrot.lane.b32.xlu0 %v25_v0, %s625_s24 }
  0x16   :  { %167 = vrot.lane.b32.xlu1 %v27_v1, %s626_s25  ;;  %165 = vrot.lane.b32.xlu0 %v25_v0, %s626_s25 }
  0x1a   :  { %148 = vrot.lane.b32.xlu1 %v27_v1, %s627_s28  ;;  %146 = vrot.lane.b32.xlu0 %v25_v0, %s627_s28 }
  0x1e   :  { %352 = vrot.lane.b32.xlu1 %v671_v3, %s622_s21  ;;  %350 = vrot.lane.b32.xlu0 %v667_v2, %s622_s21 }
  0x22   :  { %378 = vrot.lane.b32.xlu1 %v671_v3, %s621_s20  ;;  %376 = vrot.lane.b32.xlu0 %v667_v2, %s621_s20 }
  0x26   :  { %342 = vrot.lane.b32.xlu1 %v671_v3, %s623_s22  ;;  %340 = vrot.lane.b32.xlu0 %v667_v2, %s623_s22 }
  0x2a   :  { %368 = vrot.lane.b32.xlu1 %v671_v3, %s624_s23  ;;  %366 = vrot.lane.b32.xlu0 %v667_v2, %s624_s23 }
  0x2e   :  { %192 = vrot.lane.b32.xlu1 %v27_v1, %s629_s0  ;;  %190 = vrot.lane.b32.xlu0 %v25_v0, %s629_s0  ;;  %v155_v0 = vsub.s32 6, %v692_v8 }
  0x30   :  { %v793_v8 = vrot.slane %v701_v12, %v155_v0 }
  0x32   :  { %396 = vrot.lane.b32.xlu1 %v671_v3, %s625_s24  ;;  %394 = vrot.lane.b32.xlu0 %v667_v2, %s625_s24 }
  0x36   :  { %422 = vrot.lane.b32.xlu1 %v671_v3, %s626_s25  ;;  %420 = vrot.lane.b32.xlu0 %v667_v2, %s626_s25 }
  0x3a   :  { %412 = vrot.lane.b32.xlu1 %v671_v3, %s627_s28  ;;  %410 = vrot.lane.b32.xlu0 %v667_v2, %s627_s28 }
  0x3e   :  { %438 = vrot.lane.b32.xlu1 %v671_v3, %s629_s0  ;;  %436 = vrot.lane.b32.xlu0 %v667_v2, %s629_s0 }
  0x42   :  { %221 = vperm.xlu0 %618, %v24_v6  }
  0x74   :  { %v95_v14 = vpop.permute.xlu1 %94  ;;  %v51_v15 = vpop.permute.xlu0 %50 }
  0x78   :  { %v97_v21 = vpop.permute.xlu1 %96  ;;  %v53_v22 = vpop.permute.xlu0 %52 }
  0x79   :  { %v99_v26 = vsel %vm98_vm0, %v95_v14, %v97_v21  ;;  %v100_v27 = vsel %vm98_vm0, %v97_v21, %v95_v14  ;;  %v55_v28 = vsel %vm54_vm1, %v51_v15, %v53_v22  ;;  %v56_v29 = vsel %vm54_vm1, %v53_v22, %v51_v15 }
  0x7a   :  { %v109_v30 = vmul.f32 %v712_v17, %v100_v27  ;;  %v110_v31 = vmul.f32 %v715_v18, %v99_v26  ;;  %v65_v32 = vmul.f32 %v718_v19, %v56_v29  ;;  %v66_v33 = vmul.f32 %v721_v20, %v55_v28 }
  0x7b   :  { %v796_v15 = vrot.slane %v706_v13, %v155_v0 }
  0x7c   :  { %v113_v34 = vrot.slane %v109_v30, 4  ;;  %v114_v35 = vrot.slane %v110_v31, 4  ;;  %v69_v36 = vrot.slane %v65_v32, 4  ;;  %v70_v37 = vrot.slane %v66_v33, 4  ;;  %v32_v38 = vpop.permute.xlu1 %31  ;;  %v30_v39 = vpop.permute.xlu0 %29 }
  0x7d   :  { %v36_v40 = vsel %vm35_vm2, %v30_v39, %v32_v38  ;;  %v37_v41 = vsel %vm35_vm2, %v32_v38, %v30_v39 }
  0x7e   :  { %117 = vst [vmem:[#allocation2 + $0x10] sm:$0xf0] %v113_v34  ;;  %118 = vst [vmem:[#allocation2 + $0x18] sm:$0xf0] %v114_v35  ;;  %v46_v43 = vmul.f32 %v725_v23, %v37_v41  ;;  %v47_v44 = vmul.f32 %v728_v24, %v36_v40 }
  0x7f   :  { %73 = vst [vmem:[#allocation2] sm:$0xf0] %v69_v36  ;;  %74 = vst [vmem:[#allocation2 + $0x8] sm:$0xf0] %v70_v37 }
  0x80   :  { %48 = vst [vmem:[#allocation2] sm:$0xf] %v46_v43  ;;  %49 = vst [vmem:[#allocation2 + $0x8] sm:$0xf] %v47_v44  ;;  %v78_v47 = vpop.permute.xlu1 %77  ;;  %v76_v48 = vpop.permute.xlu0 %75 }
  0x81   :  { %v80_v49 = vsel %vm79_vm3, %v76_v48, %v78_v47  ;;  %v81_v50 = vsel %vm79_vm3, %v78_v47, %v76_v48 }
  0x82   :  { %v90_v52 = vmul.f32 %v749_v42, %v81_v50  ;;  %v91_v53 = vmul.f32 %v754_v45, %v80_v49 }
  0x84   :  { %92 = vst [vmem:[#allocation2 + $0x10] sm:$0xf] %v90_v52  ;;  %93 = vst [vmem:[#allocation2 + $0x18] sm:$0xf] %v91_v53  ;;  %v124_v56 = vpop.permute.xlu1 %123  ;;  %v122_v57 = vpop.permute.xlu0 %121 }
  0x85   :  { %v126_v58 = vsel %vm125_vm4, %v122_v57, %v124_v56  ;;  %v127_v59 = vsel %vm125_vm4, %v124_v56, %v122_v57 }
  0x86   :  { %v136_v61 = vmul.f32 %v766_v54, %v126_v58  ;;  %v137_v62 = vmul.f32 %v769_v55, %v127_v59 }
  0x87   :  { %v210_v16 = vld [vmem:[#allocation2 + $0x8] sm:$0xff]  ;;  %v209_v22 = vld [vmem:[#allocation2] sm:$0xff] }
  0x88   :  { %v140_v1 = vrot.slane %v136_v61, 4  ;;  %v141_v4 = vrot.slane %v137_v62, 4  ;;  %v168_v5 = vpop.permute.xlu1 %167  ;;  %v166_v6 = vpop.permute.xlu0 %165 }
  0x89   :  { %v170_v7 = vsel %vm169_vm5, %v166_v6, %v168_v5  ;;  %v171_v10 = vsel %vm169_vm5, %v168_v5, %v166_v6 }
  0x8a   :  { %144 = vst [vmem:[#allocation2 + $0x20] sm:$0xf0] %v140_v1  ;;  %145 = vst [vmem:[#allocation2 + $0x28] sm:$0xf0] %v141_v4  ;;  %v180_v11 = vmul.f32 %v777_v60, %v170_v7  ;;  %v181_v14 = vmul.f32 %v782_v63, %v171_v10 }
  0x8b   :  { %v212_v21 = vld [vmem:[#allocation2 + $0x18] sm:$0xff]  ;;  %v211_v25 = vld [vmem:[#allocation2 + $0x10] sm:$0xff] }
  0x8c   :  { %v184_v26 = vrot.slane %v180_v11, 4  ;;  %v185_v27 = vrot.slane %v181_v14, 4  ;;  %v149_v28 = vpop.permute.xlu1 %148  ;;  %v147_v29 = vpop.permute.xlu0 %146  ;;  %v592_v30 = vpack.c.bf16 %v212_v21, %v210_v16  ;;  %v594_v31 = vpack.c.bf16 %v211_v25, %v209_v22 }
  0x8d   :  { %v151_v32 = vsel %vm150_vm6, %v147_v29, %v149_v28  ;;  %v152_v12 = vsel %vm150_vm6, %v149_v28, %v147_v29 }
  0x8e   :  { %188 = vst [vmem:[#allocation2 + $0x30] sm:$0xf0] %v184_v26  ;;  %189 = vst [vmem:[#allocation2 + $0x38] sm:$0xf0] %v185_v27  ;;  %v161_v13 = vmul.f32 %v793_v8, %v151_v32  ;;  %v162_v33 = vmul.f32 %v796_v15, %v152_v12  ;;  %593 = vmatprep.subr.bf16.mxu0 %v592_v30 }
  0x8f   :  { %595 = vmatpush1.bf16.msra.mxu0 %v594_v31 }
  0x90   :  { %163 = vst [vmem:[#allocation2 + $0x30] sm:$0xf] %v161_v13  ;;  %164 = vst [vmem:[#allocation2 + $0x38] sm:$0xf] %v162_v33  ;;  %v353_v34 = vpop.permute.xlu1 %352  ;;  %v351_v35 = vpop.permute.xlu0 %350 }
  0x91   :  { %v354_v36 = vsel %vm54_vm1, %v351_v35, %v353_v34  ;;  %v355_v37 = vsel %vm54_vm1, %v353_v34, %v351_v35  ;;  %v214_v38 = vld [vmem:[#allocation2 + $0x28] sm:$0xff]  ;;  %v213_v39 = vld [vmem:[#allocation2 + $0x20] sm:$0xff] }
  0x92   :  { %v356_v40 = vmul.f32 %v355_v37, %v718_v19  ;;  %v357_v41 = vmul.f32 %v354_v36, %v721_v20  ;;  %393 = vst [vmem:[#allocation2 + $0x28] sm:$0xf] %v671_v3  ;;  %392 = vst [vmem:[#allocation2 + $0x20] sm:$0xf] %v667_v2  ;;  %v19_v37 = vld [vmem:[%s895_s1] sm:$0x3] }
  0x94   :  { %v360_v43 = vrot.slane %v356_v40, 4  ;;  %v361_v44 = vrot.slane %v357_v41, 4  ;;  %v379_v46 = vpop.permute.xlu1 %378  ;;  %v377_v47 = vpop.permute.xlu0 %376 }
  0x95   :  { %v380_v48 = vsel %vm98_vm0, %v377_v47, %v379_v46  ;;  %v381_v49 = vsel %vm98_vm0, %v379_v46, %v377_v47 }
  0x96   :  { %364 = vst [vmem:[#allocation2] sm:$0xf0] %v360_v43  ;;  %365 = vst [vmem:[#allocation2 + $0x8] sm:$0xf0] %v361_v44  ;;  %v382_v19 = vmul.f32 %v381_v49, %v712_v17  ;;  %v383_v20 = vmul.f32 %v380_v48, %v715_v18 }
  0x97   :  { %v216_v50 = vld [vmem:[#allocation2 + $0x38] sm:$0xff]  ;;  %v215_v3 = vld [vmem:[#allocation2 + $0x30] sm:$0xff] }
  0x98   :  { %v386_v51 = vrot.slane %v382_v19, 4  ;;  %v387_v2 = vrot.slane %v383_v20, 4  ;;  %v343_v52 = vpop.permute.xlu1 %342  ;;  %v341_v53 = vpop.permute.xlu0 %340  ;;  %v596_v56 = vpack.c.bf16 %v216_v50, %v214_v38  ;;  %v598_v57 = vpack.c.bf16 %v215_v3, %v213_v39 }
  0x99   :  { %v344_v58 = vsel %vm35_vm2, %v341_v53, %v343_v52  ;;  %v345_v59 = vsel %vm35_vm2, %v343_v52, %v341_v53 }
  0x9a   :  { %390 = vst [vmem:[#allocation2 + $0x10] sm:$0xf0] %v386_v51  ;;  %391 = vst [vmem:[#allocation2 + $0x18] sm:$0xf0] %v387_v2  ;;  %v346_v17 = vmul.f32 %v345_v59, %v725_v23  ;;  %v347_v18 = vmul.f32 %v344_v58, %v728_v24  ;;  %597 = vmatprep.subr.bf16.mxu0 %v596_v56  ;;  %v580_v23 = vld [vmem:[%s894_s3 + $0x10] ss:$0 sm:$0xff] }
  0x9b   :  { %599 = vmatpush1.bf16.msra.mxu0 %v598_v57  ;;  %v581_v24 = vld [vmem:[%s894_s3 + $0x18] ss:$0 sm:$0xff] }
  0x9c   :  { %348 = vst [vmem:[#allocation2] sm:$0xf] %v346_v17  ;;  %349 = vst [vmem:[#allocation2 + $0x8] sm:$0xf] %v347_v18  ;;  %v369_v61 = vpop.permute.xlu1 %368  ;;  %v367_v62 = vpop.permute.xlu0 %366 }
  0x9d   :  { %v370_v0 = vsel %vm79_vm3, %v367_v62, %v369_v61  ;;  %v371_v1 = vsel %vm79_vm3, %v369_v61, %v367_v62 }
  0x9e   :  { %v372_v4 = vmul.f32 %v371_v1, %v749_v42  ;;  %v373_v5 = vmul.f32 %v370_v0, %v754_v45 }
  0xa0   :  { %374 = vst [vmem:[#allocation2 + $0x10] sm:$0xf] %v372_v4  ;;  %375 = vst [vmem:[#allocation2 + $0x18] sm:$0xf] %v373_v5  ;;  %v193_v6 = vpop.permute.xlu1 %192  ;;  %v191_v7 = vpop.permute.xlu0 %190 }
  0xa1   :  { %v195_v10 = vsel %vm194_vm7, %v191_v7, %v193_v6  ;;  %v196_v42 = vsel %vm194_vm7, %v193_v6, %v191_v7 }
  0xa2   :  { %v205_v45 = vmul.f32 %v580_v23, %v195_v10  ;;  %v206_v11 = vmul.f32 %v581_v24, %v196_v42 }
  0xa3   :  { %v447_v27 = vld [vmem:[#allocation2 + $0x8] sm:$0xff]  ;;  %v446_v29 = vld [vmem:[#allocation2] sm:$0xff] }
  0xa4   :  { %207 = vst [vmem:[#allocation2 + $0x40] sm:$0xf] %v205_v45  ;;  %208 = vst [vmem:[#allocation2 + $0x48] sm:$0xf] %v206_v11  ;;  %v397_v14 = vpop.permute.xlu1 %396  ;;  %v395_v16 = vpop.permute.xlu0 %394 }
  0xa5   :  { %v398_v21 = vsel %vm125_vm4, %v395_v16, %v397_v14  ;;  %v399_v22 = vsel %vm125_vm4, %v397_v14, %v395_v16 }
  0xa6   :  { %v400_v25 = vmul.f32 %v398_v21, %v766_v54  ;;  %v401_v26 = vmul.f32 %v399_v22, %v769_v55 }
  0xa7   :  { %v449_v28 = vld [vmem:[#allocation2 + $0x18] sm:$0xff]  ;;  %v448_v30 = vld [vmem:[#allocation2 + $0x10] sm:$0xff] }
  0xa8   :  { %v404_v31 = vrot.slane %v400_v25, 4  ;;  %v405_v32 = vrot.slane %v401_v26, 4  ;;  %v423_v12 = vpop.permute.xlu1 %422  ;;  %v421_v13 = vpop.permute.xlu0 %420  ;;  %v600_v33 = vpack.c.bf16 %v449_v28, %v447_v27  ;;  %v602_v34 = vpack.c.bf16 %v448_v30, %v446_v29 }
  0xa9   :  { %v424_v35 = vsel %vm169_vm5, %v421_v13, %v423_v12  ;;  %v425_v36 = vsel %vm169_vm5, %v423_v12, %v421_v13 }
  0xaa   :  { %408 = vst [vmem:[#allocation2 + $0x20] sm:$0xf0] %v404_v31  ;;  %409 = vst [vmem:[#allocation2 + $0x28] sm:$0xf0] %v405_v32  ;;  %v426_v54 = vmul.f32 %v424_v35, %v777_v60  ;;  %v427_v55 = vmul.f32 %v425_v36, %v782_v63  ;;  %601 = vmatprep.subr.bf16.mxu1 %v600_v33 }
  0xab   :  { %603 = vmatpush1.bf16.msra.mxu1 %v602_v34  ;;  %v218_v38 = vld [vmem:[#allocation2 + $0x48] sm:$0xf]  ;;  %v217_v39 = vld [vmem:[#allocation2 + $0x40] sm:$0xf] }
  0xac   :  { %v430_v40 = vrot.slane %v426_v54, 4  ;;  %v431_v41 = vrot.slane %v427_v55, 4  ;;  %v413_v43 = vpop.permute.xlu1 %412  ;;  %v411_v44 = vpop.permute.xlu0 %410  ;;  %582 = vmatprep.subr.msk.mxu0 %vm228_vm8, %v218_v38 }
  0xad   :  { %v414_v60 = vsel %vm150_vm6, %v411_v44, %v413_v43  ;;  %v415_v63 = vsel %vm150_vm6, %v413_v43, %v411_v44  ;;  %583 = vmatpush1.msk.msra.mxu0 %vm228_vm8, %v217_v39 }
  0xae   :  { %434 = vst [vmem:[#allocation2 + $0x30] sm:$0xf0] %v430_v40  ;;  %435 = vst [vmem:[#allocation2 + $0x38] sm:$0xf0] %v431_v41  ;;  %v416_v46 = vmul.f32 %v414_v60, %v793_v8  ;;  %v417_v47 = vmul.f32 %v415_v63, %v796_v15  ;;  %584 = vmatmul.mubr.msk.f32.vlgmr.msra.gmra.mrb[0].mxu0 %vm224_vm9, %v19_v37 }
  0xb0   :  { %418 = vst [vmem:[#allocation2 + $0x30] sm:$0xf] %v416_v46  ;;  %419 = vst [vmem:[#allocation2 + $0x38] sm:$0xf] %v417_v47  ;;  %v439_v48 = vpop.permute.xlu1 %438  ;;  %v437_v49 = vpop.permute.xlu0 %436 }
  0xb1   :  { %v440_v19 = vsel %vm194_vm7, %v437_v49, %v439_v48  ;;  %v441_v20 = vsel %vm194_vm7, %v439_v48, %v437_v49  ;;  %v451_v51 = vld [vmem:[#allocation2 + $0x28] sm:$0xff]  ;;  %v450_v2 = vld [vmem:[#allocation2 + $0x20] sm:$0xff] }
  0xb2   :  { %v442_v50 = vmul.f32 %v580_v23, %v440_v19  ;;  %v443_v3 = vmul.f32 %v581_v24, %v441_v20 }
  0xb4   :  { %444 = vst [vmem:[#allocation2 + $0x40] sm:$0xf] %v442_v50  ;;  %445 = vst [vmem:[#allocation2 + $0x48] sm:$0xf] %v443_v3 }
  0xb7   :  { %v453_v8 = vld [vmem:[#allocation2 + $0x38] sm:$0xff]  ;;  %v452_v15 = vld [vmem:[#allocation2 + $0x30] sm:$0xff] }
  0xb8   :  { %v604_v52 = vpack.c.bf16 %v453_v8, %v451_v51  ;;  %v606_v53 = vpack.c.bf16 %v452_v15, %v450_v2 }
  0xba   :  { %605 = vmatprep.subr.bf16.mxu1 %v604_v52 }
  0xbb   :  { %607 = vmatpush1.bf16.msra.mxu1 %v606_v53  ;;  %v455_v56 = vld [vmem:[#allocation2 + $0x48] sm:$0xf]  ;;  %v454_v57 = vld [vmem:[#allocation2 + $0x40] sm:$0xf] }
  0xbc   :  { %587 = vmatprep.subr.msk.mxu1 %vm228_vm8, %v455_v56 }
  0xbf   :  { %588 = vmatpush1.msk.msra.mxu1 %vm228_vm8, %v454_v57 }
  0xc0   :  { %589 = vmatmul.mubr.msk.f32.vlgmr.msra.gmra.mrb[0].mxu1 %vm224_vm9, %v19_v37 }
  0xc1   :  { %v222_v9 = vpop.permute.xlu0 %221 }
 0x181   :  { %v301_v58 = vpop.f32.mrb[0].mxu0 }
 0x182   :  { %v302_v59 = vadd.f32 %v301_v58, %v222_v9  ;;  %v303_v17 = vpop.f32.mrb[1].mxu0 }
 0x183   :  { %v304_v18 = vadd.f32 %v303_v17, %v222_v9 }
 0x184   :  { %v319_v61 = vsel %vm318_vm10, %v302_v59, 0.0 }
 0x185   :  { %v308_v62 = vcombine.low %v302_v59, %v304_v18  ;;  %v320_v0 = vsel %vm318_vm10, %v304_v18, 0.0 }
 0x186   :  { %v321_v1 = vadd.f32 %v320_v0, %v319_v61 }
 0x187   :  { %585 = vst.sshfl [vmem:[%s896_s4] sm:$0x33 pattern:$0x76325410] %v308_v62 }
 0x188   :  { %322 = vadd.xlane.f32.xlu1 %v321_v1 }
 0x193   :  { %v528_v4 = vpop.f32.mrb[0].mxu1 }
 0x194   :  { %v529_v5 = vadd.f32 %v528_v4, %v222_v9  ;;  %v530_v23 = vpop.f32.mrb[1].mxu1 }
 0x195   :  { %v531_v24 = vadd.f32 %v530_v23, %v222_v9 }
 0x196   :  { %v546_v6 = vsel %vm318_vm10, %v529_v5, 0.0 }
 0x197   :  { %v535_v7 = vcombine.low %v529_v5, %v531_v24  ;;  %v547_v10 = vsel %vm318_vm10, %v531_v24, 0.0 }
 0x198   :  { %v548_v42 = vadd.f32 %v547_v10, %v546_v6 }
 0x199   :  { %591 = vst.sshfl [vmem:[%s896_s4 + $0x4] sm:$0x33 pattern:$0x76325410] %v535_v7 }
 0x19a   :  { %549 = vadd.xlane.f32.xlu0 %v548_v42 }
 0x215   :  { %v323_v45 = vpop.xlane.xlu1 %322 }
 0x216   :  { %v325_v11 = vmul.f32 0.00390625, %v323_v45 }
 0x218   :  { %v326_v14 = vsub.f32 %v302_v59, %v325_v11  ;;  %v327_v16 = vsub.f32 %v304_v18, %v325_v11 }
 0x21a   :  { %v328_v21 = vmul.f32 %v326_v14, %v326_v14  ;;  %v329_v22 = vmul.f32 %v327_v16, %v327_v16 }
 0x21c   :  { %v330_v25 = vsel %vm318_vm10, %v328_v21, 0.0  ;;  %v331_v26 = vsel %vm318_vm10, %v329_v22, 0.0 }
 0x21d   :  { %v332_v27 = vadd.f32 %v331_v26, %v330_v25 }
 0x21f   :  { %333 = vadd.xlane.f32.xlu1 %v332_v27 }
 0x227   :  { %v550_v28 = vpop.xlane.xlu0 %549 }
 0x228   :  { %v551_v29 = vmul.f32 0.00390625, %v550_v28 }
 0x22a   :  { %v561_v30 = vsub.f32 %v551_v29, %v325_v11  ;;  %v552_v31 = vsub.f32 %v529_v5, %v551_v29  ;;  %v553_v32 = vsub.f32 %v531_v24, %v551_v29 }
 0x22c   :  { %v562_v12 = vmul.f32 0.5, %v561_v30  ;;  %v554_v13 = vmul.f32 %v552_v31, %v552_v31  ;;  %v555_v33 = vmul.f32 %v553_v32, %v553_v32  ;;  %v565_v55 = vmul.f32 %v561_v30, %v561_v30 }
 0x22e   :  { %v563_v34 = vadd.f32 %v562_v12, %v325_v11  ;;  %v556_v35 = vsel %vm318_vm10, %v554_v13, 0.0  ;;  %v557_v36 = vsel %vm318_vm10, %v555_v33, 0.0  ;;  %v566_v40 = vmul.f32 128.0, %v565_v55 }
 0x22f   :  { %v558_v54 = vadd.f32 %v557_v36, %v556_v35 }
 0x230   :  { %569 = vst.msk [vmem:[%s897_s5] sm:$0x3] %vm568_vm11, %v563_v34 }
 0x231   :  { %559 = vadd.xlane.f32.xlu0 %v558_v54 }
 0x2ac   :  { %v334_v37 = vpop.xlane.xlu1 %333 }
 0x2be   :  { %v560_v38 = vpop.xlane.xlu0 %559 }
 0x2bf   :  { %v564_v39 = vadd.f32 %v560_v38, %v334_v37 }
 0x2c1   :  { %v567_v41 = vadd.f32 %v566_v40, %v564_v39 }
 0x2c3   :  { %571 = vst.msk [vmem:[%s897_s5] sm:$0x3] %vm570_vm12, %v567_v41 }

// kernel: outconv2_pallas.3
= control target key start
LH: loop header
LB: loop body
LE: loop exit
PB: predicated region body
PF: predicated region fallthrough
CT: control target
= control target key end

     0   :  { %v620_v0 = vmov 0   ;;  %v621_v3 = vmov 269488144   ;;  %v39_v5 = vlaneseq  ;;  %v622_v9 = vmov 1983009808   ;;  %s624_s26 = smov 16   ;;  %s928_s1 = inlined_call_operand.vmem [shape: f32[2,1], index: 1, kind: input, shape index: {}]   ;;  %s929_s2 = inlined_call_operand.vmem [shape: f32[2,1], index: 2, kind: input, shape index: {}]   ;;  %s930_s0 = inlined_call_operand.vmem [shape: f32[2,2,256], index: 0, kind: input, shape index: {}]   ;;  %s931_s4 = inlined_call_operand.vmem [shape: f32[4,1], index: 4, kind: input, shape index: {}]   ;;  %s932_s5 = inlined_call_operand.vmem [shape: f32[9,256], index: 5, kind: input, shape index: {}]   ;;  %s933_s3 = inlined_call_operand.vmem [shape: f32[4,18], index: 3, kind: input, shape index: {}]   ;;  %s934_s6 = inlined_call_operand.vmem [shape: f32[2,4,256], index: 6, kind: output, shape index: {}]  }
   0x1   :  { %619 = vset.pattern.permute.xlu0 %v620_v0  ;;  %v29_v1 = vld [vmem:[%s928_s1] sm:$0x3]  ;;  %v37_v4 = vunpack.c.l.s4 %v621_v3  ;;  %v61_v10 = vunpack.c.l.s4 %v622_v9  ;;  %s625_s27 = smov 1   ;;  %s626_s28 = smov 127   ;;  %v593_v23 = vld [vmem:[%s930_s0 + $0x4] sm:$0xf] }
   0x2   :  { %34 = vperm.xlu0 %619, %v29_v1   ;;  %v30_v2 = vld [vmem:[%s929_s2] sm:$0x3]  ;;  %v674_v7 = vshrl.u32 %v39_v5, 7  ;;  %s623_s2 = smov 15   ;;  %s627_s29 = smov 113   ;;  %v631_v28 = vmov 0.0  }
   0x3   :  { %v38_v6 = vunpack.c.0.s8 %v37_v4  ;;  %v31_v13 = vld [vmem:[%s930_s0] sm:$0xf]  ;;  %v62_v14 = vunpack.c.0.s8 %v61_v10  ;;  %s628_s8 = smov 112   ;;  %s629_s9 = smov 17   ;;  %348 = vmatprep.mubr.f32.mxu0 %v631_v28  ;;  %570 = vmatprep.mubr.f32.mxu1 %v631_v28  ;;  %v731_v31 = vand.u32 127, %v39_v5  ;;  %v742_v34 = vld [vmem:[%s932_s5 + $0x8] sm:$0xff] }
   0x4   :  { %s630_s10 = smov 111   ;;  %v28_v30 = vld [vmem:[%s931_s4] sm:$0xf]  ;;  %v100_v32 = vsub.s32 1, %v674_v7  ;;  %v125_v37 = vsub.s32 2, %v674_v7  ;;  %v150_v48 = vsub.s32 3, %v674_v7 }
   0x5   :  { %v41_v8 = vsub.s32 %v38_v6, %v674_v7  ;;  %v65_v18 = vsub.s32 %v62_v14, %v674_v7  ;;  %v737_v33 = vld [vmem:[%s932_s5] sm:$0xff]  ;;  %vm95_vm0 = vcmp.lt.s32.totalorder %v731_v31, 16  ;;  %vm120_vm1 = vcmp.lt.s32.totalorder %v731_v31, 15 }
   0x6   :  { %47 = vperm.xlu0 %619, %v30_v2   ;;  %v747_v38 = vrot.slane %v737_v33, %v100_v32  ;;  %v750_v39 = vrot.slane %v742_v34, %v100_v32  ;;  %v758_v44 = vrot.slane %v737_v33, %v125_v37  ;;  %v763_v47 = vrot.slane %v742_v34, %v125_v37 }
   0x7   :  { %vm145_vm2 = vcmp.lt.s32.totalorder %v731_v31, 1  ;;  %v177_v55 = vsub.s32 5, %v674_v7  ;;  %v775_v58 = vrot.slane %v737_v33, %v150_v48  ;;  %v778_v59 = vrot.slane %v742_v34, %v150_v48 }
   0x8   :  { %vm172_vm3 = vcmp.lt.s32.totalorder %v731_v31, 127  ;;  %v202_v6 = vsub.s32 6, %v674_v7  ;;  %vm197_vm4 = vcmp.lt.s32.totalorder %v731_v31, 113  ;;  %v227_v14 = vsub.s32 7, %v674_v7 }
   0x9   :  { %v786_v2 = vrot.slane %v737_v33, %v177_v55  ;;  %v791_v5 = vrot.slane %v742_v34, %v177_v55  ;;  %vm222_vm5 = vcmp.lt.s32.totalorder %v731_v31, 112  ;;  %vm76_vm6 = vcmp.lt.s32.totalorder %v731_v31, 17 }
   0xa   :  { %v819_v32 = vrot.slane %v742_v34, %v227_v14  ;;  %vm247_vm7 = vcmp.lt.s32.totalorder %v731_v31, 111  ;;  %vm277_vm8 = vcmask 1041408   ;;  %vm273_vm9 = vcmask 146432  }
  0x81   :  { %v35_v11 = vpop.permute.xlu0 %34 }
  0x82   :  { %v42_v12 = vrot.slane %v35_v11, %v41_v8 }
  0x84   :  { %v44_v16 = vmul.f32 %v42_v12, %v31_v13  ;;  %v362_v24 = vmul.f32 %v593_v23, %v42_v12 }
  0x85   :  { %v48_v15 = vpop.permute.xlu0 %47 }
  0x86   :  { %v55_v17 = vrot.slane %v48_v15, %v41_v8 }
  0x88   :  { %v57_v19 = vadd.f32 %v55_v17, %v44_v16  ;;  %v694_v25 = vadd.f32 %v362_v24, %v55_v17  ;;  %v803_v17 = vrot.slane %v737_v33, %v202_v6 }
  0x8a   :  { %v58_v20 = vmax.f32 %v57_v19, 0.0  ;;  %v364_v26 = vmax.f32 %v694_v25, 0.0 }
  0x8c   :  { %v66_v21 = vrot.slane %v58_v20, %v65_v18  ;;  %587 = vst.sshfl [vmem:[#allocation2 + $0x10] sm:$0x3 pattern:$0x76325410] %v58_v20  ;;  %v372_v27 = vrot.slane %v364_v26, %v65_v18  ;;  %v806_v18 = vrot.slane %v742_v34, %v202_v6 }
  0x8e   :  { %116 = vrot.lane.b32.xlu0 %v66_v21, %s623_s2  ;;  %91 = vrot.lane.b32.xlu1 %v66_v21, %s624_s26  ;;  %v67_v22 = vcombine.high %v66_v21, %v66_v21  ;;  %v705_v29 = vcombine.high %v372_v27, %v372_v27 }
  0x90   :  { %167 = vst [vmem:[#allocation2 + $0x18] sm:$0x3] %v67_v22 }
  0x92   :  { %141 = vrot.lane.b32.xlu0 %v66_v21, %s625_s27  ;;  %93 = vrot.lane.b32.xlu1 %v67_v22, %s624_s26 }
  0x96   :  { %168 = vrot.lane.b32.xlu0 %v66_v21, %s626_s28  ;;  %118 = vrot.lane.b32.xlu1 %v67_v22, %s623_s2 }
  0x9a   :  { %193 = vrot.lane.b32.xlu0 %v66_v21, %s627_s29  ;;  %143 = vrot.lane.b32.xlu1 %v67_v22, %s625_s27 }
  0x9e   :  { %218 = vrot.lane.b32.xlu0 %v66_v21, %s628_s8  ;;  %170 = vrot.lane.b32.xlu1 %v67_v22, %s626_s28 }
  0xa2   :  { %70 = vrot.lane.b32.xlu0 %v66_v21, %s629_s9  ;;  %195 = vrot.lane.b32.xlu1 %v67_v22, %s627_s29 }
  0xa6   :  { %243 = vrot.lane.b32.xlu0 %v66_v21, %s630_s10  ;;  %220 = vrot.lane.b32.xlu1 %v67_v22, %s628_s8 }
  0xaa   :  { %386 = vrot.lane.b32.xlu0 %v372_v27, %s624_s26  ;;  %72 = vrot.lane.b32.xlu1 %v67_v22, %s629_s9 }
  0xae   :  { %402 = vrot.lane.b32.xlu0 %v372_v27, %s623_s2  ;;  %245 = vrot.lane.b32.xlu1 %v67_v22, %s630_s10 }
  0xb2   :  { %418 = vrot.lane.b32.xlu0 %v372_v27, %s625_s27  ;;  %388 = vrot.lane.b32.xlu1 %v705_v29, %s624_s26 }
  0xb6   :  { %436 = vrot.lane.b32.xlu0 %v372_v27, %s626_s28  ;;  %404 = vrot.lane.b32.xlu1 %v705_v29, %s623_s2 }
  0xba   :  { %452 = vrot.lane.b32.xlu0 %v372_v27, %s627_s29  ;;  %420 = vrot.lane.b32.xlu1 %v705_v29, %s625_s27 }
  0xbe   :  { %468 = vrot.lane.b32.xlu0 %v372_v27, %s628_s8  ;;  %438 = vrot.lane.b32.xlu1 %v705_v29, %s626_s28 }
  0xc2   :  { %376 = vrot.lane.b32.xlu0 %v372_v27, %s629_s9  ;;  %454 = vrot.lane.b32.xlu1 %v705_v29, %s627_s29 }
  0xc6   :  { %484 = vrot.lane.b32.xlu0 %v372_v27, %s630_s10  ;;  %470 = vrot.lane.b32.xlu1 %v705_v29, %s628_s8  ;;  %v814_v27 = vrot.slane %v737_v33, %v227_v14 }
  0xca   :  { %270 = vperm.xlu0 %619, %v28_v30   ;;  %378 = vrot.lane.b32.xlu1 %v705_v29, %s629_s9 }
  0xce   :  { %486 = vrot.lane.b32.xlu1 %v705_v29, %s630_s10 }
 0x100   :  { %v117_v35 = vpop.permute.xlu0 %116  ;;  %v92_v36 = vpop.permute.xlu1 %91 }
 0x104   :  { %v142_v40 = vpop.permute.xlu0 %141  ;;  %v94_v41 = vpop.permute.xlu1 %93 }
 0x105   :  { %v96_v42 = vsel %vm95_vm0, %v92_v36, %v94_v41  ;;  %v97_v43 = vsel %vm95_vm0, %v94_v41, %v92_v36 }
 0x106   :  { %v106_v45 = vmul.f32 %v747_v38, %v97_v43  ;;  %v107_v46 = vmul.f32 %v750_v39, %v96_v42 }
 0x108   :  { %v110_v49 = vrot.slane %v106_v45, 6  ;;  %v111_v50 = vrot.slane %v107_v46, 6  ;;  %v169_v51 = vpop.permute.xlu0 %168  ;;  %v119_v52 = vpop.permute.xlu1 %118 }
 0x109   :  { %v121_v53 = vsel %vm120_vm1, %v117_v35, %v119_v52  ;;  %v122_v54 = vsel %vm120_vm1, %v119_v52, %v117_v35  ;;  %v81_v35 = vsub.s32 0, %v674_v7 }
 0x10a   :  { %114 = vst [vmem:[#allocation2] sm:$0xc] %v110_v49  ;;  %115 = vst [vmem:[#allocation2 + $0x8] sm:$0xc] %v111_v50  ;;  %v131_v56 = vmul.f32 %v758_v44, %v122_v54  ;;  %v132_v57 = vmul.f32 %v763_v47, %v121_v53 }
 0x10b   :  { %v830_v7 = vrot.slane %v737_v33, %v81_v35  ;;  %v833_v48 = vrot.slane %v742_v34, %v81_v35  ;;  %v845_v34 = vld [vmem:[%s932_s5 + $0x10] ss:$0 sm:$0xff] }
 0x10c   :  { %v135_v60 = vrot.slane %v131_v56, 4  ;;  %v136_v61 = vrot.slane %v132_v57, 4  ;;  %v194_v62 = vpop.permute.xlu0 %193  ;;  %v144_v63 = vpop.permute.xlu1 %143  ;;  %v850_v56 = vld [vmem:[%s932_s5 + $0x18] ss:$0 sm:$0xff] }
 0x10d   :  { %v146_v0 = vsel %vm145_vm2, %v142_v40, %v144_v63  ;;  %v147_v1 = vsel %vm145_vm2, %v144_v63, %v142_v40 }
 0x10e   :  { %139 = vst [vmem:[#allocation2] sm:$0x30] %v135_v60  ;;  %140 = vst [vmem:[#allocation2 + $0x8] sm:$0x30] %v136_v61  ;;  %v156_v3 = vmul.f32 %v775_v58, %v147_v1  ;;  %v157_v4 = vmul.f32 %v778_v59, %v146_v0 }
 0x110   :  { %v160_v8 = vrot.slane %v156_v3, 2  ;;  %v161_v9 = vrot.slane %v157_v4, 2  ;;  %v219_v10 = vpop.permute.xlu0 %218  ;;  %v171_v11 = vpop.permute.xlu1 %170 }
 0x111   :  { %v173_v12 = vsel %vm172_vm3, %v169_v51, %v171_v11  ;;  %v174_v13 = vsel %vm172_vm3, %v171_v11, %v169_v51 }
 0x112   :  { %164 = vst [vmem:[#allocation2] sm:$0xc0] %v160_v8  ;;  %165 = vst [vmem:[#allocation2 + $0x8] sm:$0xc0] %v161_v9  ;;  %v183_v15 = vmul.f32 %v786_v2, %v173_v12  ;;  %v184_v16 = vmul.f32 %v791_v5, %v174_v13 }
 0x114   :  { %v187_v19 = vrot.slane %v183_v15, 6  ;;  %v188_v20 = vrot.slane %v184_v16, 6  ;;  %v71_v21 = vpop.permute.xlu0 %70  ;;  %v196_v22 = vpop.permute.xlu1 %195 }
 0x115   :  { %v198_v23 = vsel %vm197_vm4, %v194_v62, %v196_v22  ;;  %v199_v24 = vsel %vm197_vm4, %v196_v22, %v194_v62 }
 0x116   :  { %191 = vst [vmem:[#allocation2 + $0x10] sm:$0xc] %v187_v19  ;;  %192 = vst [vmem:[#allocation2 + $0x18] sm:$0xc] %v188_v20  ;;  %v208_v28 = vmul.f32 %v803_v17, %v198_v23  ;;  %v209_v30 = vmul.f32 %v806_v18, %v199_v24 }
 0x118   :  { %v212_v36 = vrot.slane %v208_v28, 4  ;;  %v213_v37 = vrot.slane %v209_v30, 4  ;;  %v244_v40 = vpop.permute.xlu0 %243  ;;  %v221_v41 = vpop.permute.xlu1 %220 }
 0x119   :  { %v223_v42 = vsel %vm222_vm5, %v219_v10, %v221_v41  ;;  %v224_v43 = vsel %vm222_vm5, %v221_v41, %v219_v10 }
 0x11a   :  { %216 = vst [vmem:[#allocation2 + $0x10] sm:$0x30] %v212_v36  ;;  %217 = vst [vmem:[#allocation2 + $0x18] sm:$0x30] %v213_v37  ;;  %v233_v45 = vmul.f32 %v814_v27, %v223_v42  ;;  %v234_v46 = vmul.f32 %v819_v32, %v224_v43 }
 0x11c   :  { %v237_v49 = vrot.slane %v233_v45, 2  ;;  %v238_v50 = vrot.slane %v234_v46, 2  ;;  %v387_v51 = vpop.permute.xlu0 %386  ;;  %v73_v52 = vpop.permute.xlu1 %72 }
 0x11d   :  { %v77_v53 = vsel %vm76_vm6, %v71_v21, %v73_v52  ;;  %v78_v54 = vsel %vm76_vm6, %v73_v52, %v71_v21 }
 0x11e   :  { %241 = vst [vmem:[#allocation2 + $0x10] sm:$0xc0] %v237_v49  ;;  %242 = vst [vmem:[#allocation2 + $0x18] sm:$0xc0] %v238_v50  ;;  %v87_v55 = vmul.f32 %v830_v7, %v78_v54  ;;  %v88_v33 = vmul.f32 %v833_v48, %v77_v53 }
 0x120   :  { %89 = vst [vmem:[#allocation2] sm:$0x3] %v87_v55  ;;  %90 = vst [vmem:[#allocation2 + $0x8] sm:$0x3] %v88_v33  ;;  %v403_v57 = vpop.permute.xlu0 %402  ;;  %v246_v60 = vpop.permute.xlu1 %245 }
 0x121   :  { %v248_v61 = vsel %vm247_vm7, %v244_v40, %v246_v60  ;;  %v249_v62 = vsel %vm247_vm7, %v246_v60, %v244_v40 }
 0x122   :  { %v258_v63 = vmul.f32 %v845_v34, %v248_v61  ;;  %v259_v0 = vmul.f32 %v850_v56, %v249_v62 }
 0x124   :  { %260 = vst [vmem:[#allocation2 + $0x20] sm:$0x3] %v258_v63  ;;  %261 = vst [vmem:[#allocation2 + $0x28] sm:$0x3] %v259_v0  ;;  %v419_v1 = vpop.permute.xlu0 %418  ;;  %v389_v3 = vpop.permute.xlu1 %388 }
 0x125   :  { %v390_v4 = vsel %vm95_vm0, %v387_v51, %v389_v3  ;;  %v391_v6 = vsel %vm95_vm0, %v389_v3, %v387_v51  ;;  %v265_v8 = vld [vmem:[#allocation2 + $0x18] sm:$0xff]  ;;  %v264_v9 = vld [vmem:[#allocation2 + $0x10] sm:$0xff] }
 0x126   :  { %v392_v10 = vmul.f32 %v391_v6, %v747_v38  ;;  %v393_v11 = vmul.f32 %v390_v4, %v750_v39  ;;  %435 = vst [vmem:[#allocation2 + $0x18] sm:$0x3] %v705_v29  ;;  %594 = vst.sshfl [vmem:[#allocation2 + $0x10] sm:$0x3 pattern:$0x76325410] %v364_v26 }
 0x127   :  { %v262_v12 = vld [vmem:[#allocation2] sm:$0xff]  ;;  %v263_v13 = vld [vmem:[#allocation2 + $0x8] sm:$0xff] }
 0x128   :  { %v396_v14 = vrot.slane %v392_v10, 6  ;;  %v397_v15 = vrot.slane %v393_v11, 6  ;;  %v437_v16 = vpop.permute.xlu0 %436  ;;  %v405_v19 = vpop.permute.xlu1 %404  ;;  %v599_v20 = vpack.c.bf16 %v265_v8, %v263_v13  ;;  %v601_v21 = vpack.c.bf16 %v264_v9, %v262_v12 }
 0x129   :  { %v406_v22 = vsel %vm120_vm1, %v403_v57, %v405_v19  ;;  %v407_v38 = vsel %vm120_vm1, %v405_v19, %v403_v57 }
 0x12a   :  { %400 = vst [vmem:[#allocation2] sm:$0xc] %v396_v14  ;;  %v408_v29 = vmul.f32 %v407_v38, %v758_v44  ;;  %v409_v25 = vmul.f32 %v406_v22, %v763_v47  ;;  %600 = vmatprep.subr.bf16.mxu0 %v599_v20  ;;  %401 = vst [vmem:[#allocation2 + $0x8] sm:$0xc] %v397_v15  ;;  %v881_v44 = vld [vmem:[%s933_s3] sm:$0xf] }
 0x12b   :  { %602 = vmatpush1.bf16.msra.mxu0 %v601_v21  ;;  %v267_v26 = vld [vmem:[#allocation2 + $0x28] sm:$0x3]  ;;  %v266_v37 = vld [vmem:[#allocation2 + $0x20] sm:$0x3] }
 0x12c   :  { %v412_v39 = vrot.slane %v408_v29, 4  ;;  %v413_v23 = vrot.slane %v409_v25, 4  ;;  %v421_v24 = vpop.permute.xlu1 %420  ;;  %590 = vmatprep.subr.msk.mxu0 %vm277_vm8, %v267_v26  ;;  %v453_v47 = vpop.permute.xlu0 %452 }
 0x12d   :  { %v422_v28 = vsel %vm145_vm2, %v419_v1, %v421_v24  ;;  %v423_v30 = vsel %vm145_vm2, %v421_v24, %v419_v1 }
 0x12e   :  { %416 = vst [vmem:[#allocation2] sm:$0x30] %v412_v39  ;;  %417 = vst [vmem:[#allocation2 + $0x8] sm:$0x30] %v413_v23  ;;  %v424_v35 = vmul.f32 %v423_v30, %v775_v58  ;;  %v425_v36 = vmul.f32 %v422_v28, %v778_v59 }
 0x12f   :  { %591 = vmatpush1.msk.msra.mxu0 %vm277_vm8, %v266_v37 }
 0x130   :  { %v428_v40 = vrot.slane %v424_v35, 2  ;;  %v429_v41 = vrot.slane %v425_v36, 2  ;;  %v439_v42 = vpop.permute.xlu1 %438  ;;  %592 = vmatmul.mubr.msk.f32.vlgmr.msra.gmra.mrb[0].mxu0 %vm273_vm9, %v881_v44  ;;  %v469_v46 = vpop.permute.xlu0 %468 }
 0x131   :  { %v440_v43 = vsel %vm172_vm3, %v437_v16, %v439_v42  ;;  %v441_v45 = vsel %vm172_vm3, %v439_v42, %v437_v16 }
 0x132   :  { %432 = vst [vmem:[#allocation2] sm:$0xc0] %v428_v40  ;;  %433 = vst [vmem:[#allocation2 + $0x8] sm:$0xc0] %v429_v41  ;;  %v442_v58 = vmul.f32 %v440_v43, %v786_v2  ;;  %v443_v59 = vmul.f32 %v441_v45, %v791_v5 }
 0x134   :  { %v446_v49 = vrot.slane %v442_v58, 6  ;;  %v447_v50 = vrot.slane %v443_v59, 6  ;;  %v455_v51 = vpop.permute.xlu1 %454  ;;  %v377_v61 = vpop.permute.xlu0 %376 }
 0x135   :  { %v456_v52 = vsel %vm197_vm4, %v453_v47, %v455_v51  ;;  %v457_v53 = vsel %vm197_vm4, %v455_v51, %v453_v47 }
 0x136   :  { %450 = vst [vmem:[#allocation2 + $0x10] sm:$0xc] %v446_v49  ;;  %451 = vst [vmem:[#allocation2 + $0x18] sm:$0xc] %v447_v50  ;;  %v458_v54 = vmul.f32 %v456_v52, %v803_v17  ;;  %v459_v55 = vmul.f32 %v457_v53, %v806_v18 }
 0x138   :  { %v462_v33 = vrot.slane %v458_v54, 4  ;;  %v463_v2 = vrot.slane %v459_v55, 4  ;;  %v471_v57 = vpop.permute.xlu1 %470  ;;  %v485_v8 = vpop.permute.xlu0 %484 }
 0x139   :  { %v472_v5 = vsel %vm222_vm5, %v469_v46, %v471_v57  ;;  %v473_v60 = vsel %vm222_vm5, %v471_v57, %v469_v46 }
 0x13a   :  { %466 = vst [vmem:[#allocation2 + $0x10] sm:$0x30] %v462_v33  ;;  %467 = vst [vmem:[#allocation2 + $0x18] sm:$0x30] %v463_v2  ;;  %v474_v62 = vmul.f32 %v472_v5, %v814_v27  ;;  %v475_v63 = vmul.f32 %v473_v60, %v819_v32 }
 0x13c   :  { %v478_v0 = vrot.slane %v474_v62, 2  ;;  %v479_v17 = vrot.slane %v475_v63, 2  ;;  %v379_v1 = vpop.permute.xlu1 %378 }
 0x13d   :  { %v380_v18 = vsel %vm76_vm6, %v377_v61, %v379_v1  ;;  %v381_v3 = vsel %vm76_vm6, %v379_v1, %v377_v61 }
 0x13e   :  { %482 = vst [vmem:[#allocation2 + $0x10] sm:$0xc0] %v478_v0  ;;  %483 = vst [vmem:[#allocation2 + $0x18] sm:$0xc0] %v479_v17  ;;  %v382_v4 = vmul.f32 %v381_v3, %v830_v7  ;;  %v383_v6 = vmul.f32 %v380_v18, %v833_v48 }
 0x140   :  { %384 = vst [vmem:[#allocation2] sm:$0x3] %v382_v4  ;;  %385 = vst [vmem:[#allocation2 + $0x8] sm:$0x3] %v383_v6  ;;  %v487_v27 = vpop.permute.xlu1 %486 }
 0x141   :  { %v488_v32 = vsel %vm247_vm7, %v485_v8, %v487_v27  ;;  %v489_v9 = vsel %vm247_vm7, %v487_v27, %v485_v8 }
 0x142   :  { %v490_v10 = vmul.f32 %v845_v34, %v488_v32  ;;  %v491_v11 = vmul.f32 %v850_v56, %v489_v9 }
 0x144   :  { %492 = vst [vmem:[#allocation2 + $0x20] sm:$0x3] %v490_v10  ;;  %493 = vst [vmem:[#allocation2 + $0x28] sm:$0x3] %v491_v11 }
 0x145   :  { %v497_v12 = vld [vmem:[#allocation2 + $0x18] sm:$0xff]  ;;  %v496_v48 = vld [vmem:[#allocation2 + $0x10] sm:$0xff] }
 0x147   :  { %v495_v7 = vld [vmem:[#allocation2 + $0x8] sm:$0xff]  ;;  %v494_v13 = vld [vmem:[#allocation2] sm:$0xff] }
 0x148   :  { %v603_v14 = vpack.c.bf16 %v497_v12, %v495_v7  ;;  %v605_v15 = vpack.c.bf16 %v496_v48, %v494_v13 }
 0x149   :  { %v271_v31 = vpop.permute.xlu0 %270 }
 0x14a   :  { %604 = vmatprep.subr.bf16.mxu1 %v603_v14 }
 0x14b   :  { %606 = vmatpush1.bf16.msra.mxu1 %v605_v15  ;;  %v499_v16 = vld [vmem:[#allocation2 + $0x28] sm:$0x3]  ;;  %v498_v19 = vld [vmem:[#allocation2 + $0x20] sm:$0x3] }
 0x14c   :  { %595 = vmatprep.subr.msk.mxu1 %vm277_vm8, %v499_v16 }
 0x14f   :  { %596 = vmatpush1.msk.msra.mxu1 %vm277_vm8, %v498_v19 }
 0x150   :  { %597 = vmatmul.mubr.msk.f32.vlgmr.msra.gmra.mrb[0].mxu1 %vm273_vm9, %v881_v44 }
 0x203   :  { %v350_v34 = vpop.f32.mrb[0].mxu0 }
 0x204   :  { %v351_v56 = vadd.f32 %v350_v34, %v271_v31  ;;  %v352_v20 = vpop.f32.mrb[1].mxu0 }
 0x205   :  { %v353_v21 = vadd.f32 %v352_v20, %v271_v31 }
 0x207   :  { %v357_v22 = vcombine.low %v351_v56, %v353_v21 }
 0x209   :  { %359 = vst [vmem:[%s934_s6] sm:$0xff] %v357_v22 }
 0x223   :  { %v572_v38 = vpop.f32.mrb[0].mxu1 }
 0x224   :  { %v573_v29 = vadd.f32 %v572_v38, %v271_v31  ;;  %v574_v25 = vpop.f32.mrb[1].mxu1 }
 0x225   :  { %v575_v26 = vadd.f32 %v574_v25, %v271_v31 }
 0x227   :  { %v579_v39 = vcombine.low %v573_v29, %v575_v26 }
 0x229   :  { %598 = vst [vmem:[%s934_s6 + $0x8] sm:$0xff] %v579_v39 }

</bundles_post_ra>
